<compile_context>
chip_gen: v6e
topology: v6e:2x2x1
jax: 0.10.0
libtpu: 0.0.40
codegen_flags: <defaults>
</compile_context>

<pallas_src>
import numpy as np
import jax
import jax.numpy as jnp
from jax import lax
from jax.experimental import pallas as pl
from jax.experimental.pallas import tpu as pltpu

# ---------------- scaled-down AudioMAE config ----------------
B = 2                   # batch (n_sounds)
N_SAMPLES = 2048        # samples per clip (scaled down from 10 s @ 44.1 kHz)
WIN, HOP = 256, 128     # analysis window / hop (scaled)
F_MEL = 16              # mel bins (scaled from 128)
TARGET_T = 32           # target #frames (scaled from 1024)
P = 8                   # patch size (scaled from 16)
GRID_T, GRID_F = TARGET_T // P, F_MEL // P
N_PATCH = GRID_T * GRID_F            # 8 patches
SEQ = N_PATCH + 1                    # +cls token = 9
SEQ_PAD = 16                         # padded to whole 8-sublane tiles
D = 128                 # embed dim (scaled from 768)
HEADS = 4
DH = D // HEADS                      # head dim = 32
MLP = 4 * D                          # 512
DEPTH = 3                            # scaled from 12
CONTEXTUAL_DEPTH = 0                 # blocks l > CONTEXTUAL_DEPTH are averaged
N_CTX = DEPTH - 1 - CONTEXTUAL_DEPTH # number of contributing blocks (=2)

NORM_MEAN = -4.2677393
NORM_STD = 4.5689974
LN_EPS = 1e-6


# ---------------- simplified fbank frontend (plain-JAX glue) ----------------
def _make_filterbank():
    n_freqs = WIN // 2 + 1
    pts = np.linspace(0, n_freqs - 1, F_MEL + 2)
    fb = np.zeros((n_freqs, F_MEL), np.float32)
    freqs = np.arange(n_freqs, dtype=np.float32)
    for m in range(F_MEL):
        lo, c, hi = pts[m], pts[m + 1], pts[m + 2]
        up = (freqs - lo) / max(c - lo, 1e-6)
        down = (hi - freqs) / max(hi - c, 1e-6)
        fb[:, m] = np.clip(np.minimum(up, down), 0.0, None)
    return jnp.asarray(fb)


FILTERBANK = _make_filterbank()
HANN = jnp.asarray(np.hanning(WIN).astype(np.float32))


def wav2fbank(sample):
    # sample: (1, N_SAMPLES) -- mirrors torchaudio.compliance.kaldi.fbank input.
    # TODO(synk): exact Kaldi fbank (mel warping, HTK compat, snip_edges) has no
    # clean Pallas equivalent; simplified Hann + rFFT power + triangular filterbank + log.
    a = sample[0]
    a = a - jnp.mean(a)
    n_frames = 1 + (N_SAMPLES - WIN) // HOP
    idx = jnp.arange(n_frames)[:, None] * HOP + jnp.arange(WIN)[None, :]
    frames = a[idx] * HANN[None, :]
    power = jnp.abs(jnp.fft.rfft(frames, axis=-1)) ** 2
    fbank = jnp.log(power @ FILTERBANK + 1e-6)              # (n_frames, F_MEL)
    p = TARGET_T - n_frames
    if p > 0:                                                # zero-pad rows
        fbank = jnp.pad(fbank, ((0, p), (0, 0)))
    elif p < 0:
        fbank = fbank[:TARGET_T]
    return (fbank - NORM_MEAN) / (NORM_STD * 2)


def im2col(fbanks):
    # (B, T, F) -> (B, N, P*P); patch order = row-major over (T/P, F/P), matching
    # the NCHW conv + flatten(2) of timm PatchEmbed.
    x = fbanks.reshape(B, GRID_T, P, GRID_F, P)
    x = jnp.transpose(x, (0, 1, 3, 2, 4))
    return x.reshape(B, N_PATCH, P * P)


# ---------------- in-kernel helpers ----------------
def _layernorm(x, g, b):
    mu = jnp.mean(x, axis=-1, keepdims=True)
    var = jnp.mean(jnp.square(x - mu), axis=-1, keepdims=True)
    return (x - mu) * jax.lax.rsqrt(var + LN_EPS) * g + b


def _gelu(x):
    # TODO(synk): timm uses exact erf-GELU; tanh approximation used here.
    return 0.5 * x * (1.0 + jnp.tanh(0.7978845608028654 * (x + 0.044715 * x * x * x)))


# ---------------- fused patch-embed + encoder kernel ----------------
# grid = (B, DEPTH); batch "parallel", depth "arbitrary" (carried in scratch).
def _encoder_kernel(patches_ref, wpe_ref, postok_ref,
                    ln1g, ln1b, wqkv, bqkv, wo, bo,
                    ln2g, ln2b, w1, b1, w2, b2, ng, nb,
                    out_ref, x_scr, acc_scr):
    l = pl.program_id(1)
    scale = DH ** -0.5

    # ---- layer 0: fused patch embed + token/pos assembly, reset accumulators ----
    @pl.when(l == 0)
    def _():
        pe = jnp.dot(patches_ref[0].astype(jnp.bfloat16), wpe_ref[...],
                     preferred_element_type=jnp.float32)          # (SEQ_PAD, D)
        # postok already holds cls+pos[0] in row 0, pos[1:]+conv-bias in patch
        # rows and zeros in padded rows; padded patch rows of `patches` are zero.
        x_scr[...] = pe + postok_ref[...]
        acc_scr[...] = jnp.zeros_like(acc_scr)

    x = x_scr[...]                                                # (SEQ_PAD, D) f32

    # ---- attention ----
    h1 = _layernorm(x, ln1g[0], ln1b[0]).astype(jnp.bfloat16)
    qkv = jnp.dot(h1, wqkv[0], preferred_element_type=jnp.float32) + bqkv[0]
    kmask = lax.broadcasted_iota(jnp.int32, (SEQ_PAD, SEQ_PAD), 1) < SEQ
    wo_l = wo[0]                                                  # (D, D) bf16
    att = jnp.zeros((SEQ_PAD, D), jnp.float32)
    for hh in range(HEADS):                                       # static unroll
        q = qkv[:, hh * DH:(hh + 1) * DH].astype(jnp.bfloat16)
        k = qkv[:, D + hh * DH:D + (hh + 1) * DH].astype(jnp.bfloat16)
        v = qkv[:, 2 * D + hh * DH:2 * D + (hh + 1) * DH].astype(jnp.bfloat16)
        # q @ k^T expressed as dot_general contracting the last dims (no vxpose)
        s = lax.dot_general(q, k, (((1,), (1,)), ((), ())),
                            preferred_element_type=jnp.float32) * scale
        s = jnp.where(kmask, s, -1e30)                            # mask padded keys
        s = s - jnp.max(s, axis=-1, keepdims=True)
        p = jnp.exp(s)
        p = p * pl.reciprocal(jnp.sum(p, axis=-1, keepdims=True), approx=True)
        o = jnp.dot(p.astype(jnp.bfloat16), v, preferred_element_type=jnp.float32)
        # fold the head concat into per-head slices of the output projection:
        # concat(o_h) @ Wo == sum_h o_h @ Wo[h*DH:(h+1)*DH, :]
        att = att + jnp.dot(o.astype(jnp.bfloat16),
                            wo_l[hh * DH:(hh + 1) * DH, :],
                            preferred_element_type=jnp.float32)
    x = x + att + bo[0]

    # ---- MLP ----
    h2 = _layernorm(x, ln2g[0], ln2b[0]).astype(jnp.bfloat16)
    m = _gelu(jnp.dot(h2, w1[0], preferred_element_type=jnp.float32) + b1[0])
    x = x + jnp.dot(m.astype(jnp.bfloat16), w2[0],
                    preferred_element_type=jnp.float32) + b2[0]
    x_scr[...] = x

    # ---- contextual-depth accumulation (forward_encoder_no_mask) ----
    @pl.when(l > CONTEXTUAL_DEPTH)
    def _():
        acc_scr[...] = acc_scr[...] + _layernorm(x, ng[...], nb[...])

    # ---- finalize: drop cls + padded rows, keep lane-dense (N_PATCH, D) ----
    @pl.when(l == pl.num_programs(1) - 1)
    def _():
        out_ref[0] = acc_scr[...][1:1 + N_PATCH, :] * (1.0 / N_CTX)


def encoder(patches_pad, w_pe_bf16, pos_tok, p):
    bf = lambda w: w.astype(jnp.bfloat16)
    args = (patches_pad, w_pe_bf16, pos_tok,
            p['ln1g'], p['ln1b'], bf(p['wqkv']), p['bqkv'], bf(p['wo']), p['bo'],
            p['ln2g'], p['ln2b'], bf(p['w1']), p['b1'], bf(p['w2']), p['b2'])

    def layer_spec(a):   # params stacked over DEPTH: fetch layer l's slab only
        return pl.BlockSpec((1,) + a.shape[1:],
                            lambda bb, ll: (ll,) + (0,) * (a.ndim - 1))

    def const_spec(a):   # same block every grid step (DMA'd once)
        return pl.BlockSpec(a.shape, lambda bb, ll: (0,) * a.ndim)

    in_specs = ([pl.BlockSpec((1, SEQ_PAD, P * P), lambda bb, ll: (bb, 0, 0)),
                 const_spec(w_pe_bf16),
                 const_spec(pos_tok)]
                + [layer_spec(a) for a in args[3:]]
                + [const_spec(p['ng']), const_spec(p['nb'])])

    return pl.pallas_call(
        _encoder_kernel,
        out_shape=jax.ShapeDtypeStruct((B, N_PATCH, D), jnp.float32),
        grid=(B, DEPTH),
        in_specs=in_specs,
        out_specs=pl.BlockSpec((1, N_PATCH, D), lambda bb, ll: (bb, 0, 0)),
        scratch_shapes=[pltpu.VMEM((SEQ_PAD, D), jnp.float32),   # residual stream
                        pltpu.VMEM((SEQ_PAD, D), jnp.float32)],  # contextual acc
        compiler_params=pltpu.CompilerParams(
            dimension_semantics=("parallel", "arbitrary"),
            vmem_limit_bytes=32 * 1024 * 1024),
    )(*(args + (p['ng'], p['nb'])))


# ---------------- parameter init (deterministic, synthetic) ----------------
def init_params(key):
    ks = list(jax.random.split(key, 16))
    it = iter(ks)

    def nrm(shape):
        return 0.02 * jax.random.normal(next(it), shape, jnp.float32)

    return dict(
        w_pe=nrm((P * P, D)), b_pe=jnp.zeros((1, D), jnp.float32),
        cls=nrm((1, D)), pos=nrm((SEQ, D)),
        ln1g=jnp.ones((DEPTH, 1, D), jnp.float32), ln1b=jnp.zeros((DEPTH, 1, D), jnp.float32),
        wqkv=nrm((DEPTH, D, 3 * D)), bqkv=jnp.zeros((DEPTH, 1, 3 * D), jnp.float32),
        wo=nrm((DEPTH, D, D)), bo=jnp.zeros((DEPTH, 1, D), jnp.float32),
        ln2g=jnp.ones((DEPTH, 1, D), jnp.float32), ln2b=jnp.zeros((DEPTH, 1, D), jnp.float32),
        w1=nrm((DEPTH, D, MLP)), b1=jnp.zeros((DEPTH, 1, MLP), jnp.float32),
        w2=nrm((DEPTH, MLP, D)), b2=jnp.zeros((DEPTH, 1, D), jnp.float32),
        ng=jnp.ones((1, D), jnp.float32), nb=jnp.zeros((1, D), jnp.float32),
    )


# ---------------- end-to-end forward ----------------
@jax.jit
def audiomae_forward(audio, params):
    # audio: (B, 1, N_SAMPLES) in [-1, 1]
    fbanks = jax.vmap(wav2fbank)(audio)                         # (B, T, F)
    patches = im2col(fbanks)                                    # (B, N_PATCH, P*P)
    # pad to SEQ_PAD token rows: row 0 = cls slot, rows 1..N_PATCH = patches, rest 0
    patches_pad = jnp.pad(patches, ((0, 0), (1, SEQ_PAD - SEQ), (0, 0)))
    # additive token slab: row 0 = cls + pos[0]; patch rows = pos[1:] + conv bias
    pos_tok = jnp.concatenate(
        [params['cls'] + params['pos'][:1],
         params['pos'][1:SEQ] + params['b_pe'],
         jnp.zeros((SEQ_PAD - SEQ, D), jnp.float32)], axis=0)   # (SEQ_PAD, D)
    ctx = encoder(patches_pad, params['w_pe'].astype(jnp.bfloat16), pos_tok, params)
    # module API: transpose(-1,-2) with cls already dropped inside the kernel
    return jnp.transpose(ctx, (0, 2, 1))                        # (B, D, N_PATCH)


if __name__ == "__main__":
    key = jax.random.PRNGKey(0)
    pkey, akey = jax.random.split(key)
    params = init_params(pkey)
    audio = jax.random.uniform(akey, (B, 1, N_SAMPLES), jnp.float32, -1.0, 1.0)

    emb = audiomae_forward(audio, params)
    emb = jax.block_until_ready(emb)

    assert emb.shape == (B, D, N_PATCH), emb.shape
    assert bool(jnp.all(jnp.isfinite(emb)))
    print("KERNEL_OK")
</pallas_src>

<mosaic_0001>
module attributes {stable_mosaic.version = 11 : i64} {
  func.func @_encoder_kernel(%arg0: i32, %arg1: i32, %arg2: memref<1x16x64xf32, #tpu.memory_space<vmem>>, %arg3: memref<64x128xbf16, #tpu.memory_space<vmem>>, %arg4: memref<16x128xf32, #tpu.memory_space<vmem>>, %arg5: memref<1x1x128xf32, #tpu.memory_space<vmem>>, %arg6: memref<1x1x128xf32, #tpu.memory_space<vmem>>, %arg7: memref<1x128x384xbf16, #tpu.memory_space<vmem>>, %arg8: memref<1x1x384xf32, #tpu.memory_space<vmem>>, %arg9: memref<1x128x128xbf16, #tpu.memory_space<vmem>>, %arg10: memref<1x1x128xf32, #tpu.memory_space<vmem>>, %arg11: memref<1x1x128xf32, #tpu.memory_space<vmem>>, %arg12: memref<1x1x128xf32, #tpu.memory_space<vmem>>, %arg13: memref<1x128x512xbf16, #tpu.memory_space<vmem>>, %arg14: memref<1x1x512xf32, #tpu.memory_space<vmem>>, %arg15: memref<1x512x128xbf16, #tpu.memory_space<vmem>>, %arg16: memref<1x1x128xf32, #tpu.memory_space<vmem>>, %arg17: memref<1x128xf32, #tpu.memory_space<vmem>>, %arg18: memref<1x128xf32, #tpu.memory_space<vmem>>, %arg19: memref<1x8x128xf32, #tpu.memory_space<vmem>>, %arg20: memref<16x128xf32, #tpu.memory_space<vmem>>, %arg21: memref<16x128xf32, #tpu.memory_space<vmem>>) attributes {dimension_semantics = [#tpu.dimension_semantics<parallel>, #tpu.dimension_semantics<arbitrary>], iteration_bounds = array<i64: 2, 3>, scalar_prefetch = 0 : i64, scratch_operands = 2 : i64, tpu.core_type = #tpu.core_type<tc>, window_params = [{transform_indices = @transform_0, window_bounds = array<i64: 1, 16, 64>}, {pipeline_mode = #tpu.pipeline_mode<synchronous>, transform_indices = @transform_1, window_bounds = array<i64: 64, 128>}, {pipeline_mode = #tpu.pipeline_mode<synchronous>, transform_indices = @transform_2, window_bounds = array<i64: 16, 128>}, {transform_indices = @transform_3, window_bounds = array<i64: 1, 1, 128>}, {transform_indices = @transform_4, window_bounds = array<i64: 1, 1, 128>}, {transform_indices = @transform_5, window_bounds = array<i64: 1, 128, 384>}, {transform_indices = @transform_6, window_bounds = array<i64: 1, 1, 384>}, {transform_indices = @transform_7, window_bounds = array<i64: 1, 128, 128>}, {transform_indices = @transform_8, window_bounds = array<i64: 1, 1, 128>}, {transform_indices = @transform_9, window_bounds = array<i64: 1, 1, 128>}, {transform_indices = @transform_10, window_bounds = array<i64: 1, 1, 128>}, {transform_indices = @transform_11, window_bounds = array<i64: 1, 128, 512>}, {transform_indices = @transform_12, window_bounds = array<i64: 1, 1, 512>}, {transform_indices = @transform_13, window_bounds = array<i64: 1, 512, 128>}, {transform_indices = @transform_14, window_bounds = array<i64: 1, 1, 128>}, {pipeline_mode = #tpu.pipeline_mode<synchronous>, transform_indices = @transform_15, window_bounds = array<i64: 1, 128>}, {pipeline_mode = #tpu.pipeline_mode<synchronous>, transform_indices = @transform_16, window_bounds = array<i64: 1, 128>}, {transform_indices = @transform_17, window_bounds = array<i64: 1, 8, 128>}]} {
    %c0_i32 = arith.constant 0 : i32
    %0 = arith.cmpi eq, %arg1, %c0_i32 : i32
    %1 = arith.extui %0 : i1 to i32
    %c0_i32_0 = arith.constant 0 : i32
    %2 = arith.cmpi ne, %1, %c0_i32_0 : i32
    scf.if %2 {
      %c0_88 = arith.constant 0 : index
      %c0_89 = arith.constant 0 : index
      %c0_90 = arith.constant 0 : index
      %220 = vector.load %arg2[%c0_88, %c0_89, %c0_90] : memref<1x16x64xf32, #tpu.memory_space<vmem>>, vector<1x16x64xf32>
      %221 = vector.shape_cast %220 : vector<1x16x64xf32> to vector<16x64xf32>
      %222 = arith.truncf %221 : vector<16x64xf32> to vector<16x64xbf16>
      %c0_91 = arith.constant 0 : index
      %c0_92 = arith.constant 0 : index
      %223 = vector.load %arg3[%c0_91, %c0_92] : memref<64x128xbf16, #tpu.memory_space<vmem>>, vector<64x128xbf16>
      %cst_93 = arith.constant dense<0.000000e+00> : vector<16x128xf32>
      %224 = tpu.matmul %222, %223, %cst_93 {dimension_numbers = #tpu.dot_dimension_numbers<[1], [0], [0], [1], [0, 0, 1, 1], [], []>} : vector<16x64xbf16>, vector<64x128xbf16>, vector<16x128xf32> -> vector<16x128xf32>
      %c0_94 = arith.constant 0 : index
      %c0_95 = arith.constant 0 : index
      %225 = vector.load %arg4[%c0_94, %c0_95] : memref<16x128xf32, #tpu.memory_space<vmem>>, vector<16x128xf32>
      %226 = arith.addf %224, %225 : vector<16x128xf32>
      %c0_96 = arith.constant 0 : index
      %c0_97 = arith.constant 0 : index
      %227 = vector.load %arg20[%c0_96, %c0_97] : memref<16x128xf32, #tpu.memory_space<vmem>>, vector<16x128xf32>
      tpu.vector_store %arg20[%c0_96, %c0_97], %226 {strides = array<i32>} : memref<16x128xf32, #tpu.memory_space<vmem>>, vector<16x128xf32>,
      %cst_98 = arith.constant 0.000000e+00 : f32
      %228 = vector.broadcast %cst_98 : f32 to vector<16x128xf32>
      %c0_99 = arith.constant 0 : index
      %c0_100 = arith.constant 0 : index
      %229 = vector.load %arg21[%c0_99, %c0_100] : memref<16x128xf32, #tpu.memory_space<vmem>>, vector<16x128xf32>
      tpu.vector_store %arg21[%c0_99, %c0_100], %228 {strides = array<i32>} : memref<16x128xf32, #tpu.memory_space<vmem>>, vector<16x128xf32>,
    } else {
    }
    %c0 = arith.constant 0 : index
    %c0_1 = arith.constant 0 : index
    %3 = vector.load %arg20[%c0, %c0_1] : memref<16x128xf32, #tpu.memory_space<vmem>>, vector<16x128xf32>
    %c0_2 = arith.constant 0 : index
    %c0_3 = arith.constant 0 : index
    %c0_4 = arith.constant 0 : index
    %4 = vector.load %arg5[%c0_2, %c0_3, %c0_4] : memref<1x1x128xf32, #tpu.memory_space<vmem>>, vector<1x1x128xf32>
    %5 = vector.shape_cast %4 : vector<1x1x128xf32> to vector<1x128xf32>
    %c0_5 = arith.constant 0 : index
    %c0_6 = arith.constant 0 : index
    %c0_7 = arith.constant 0 : index
    %6 = vector.load %arg6[%c0_5, %c0_6, %c0_7] : memref<1x1x128xf32, #tpu.memory_space<vmem>>, vector<1x1x128xf32>
    %7 = vector.shape_cast %6 : vector<1x1x128xf32> to vector<1x128xf32>
    %cst = arith.constant dense<0.000000e+00> : vector<16xf32>
    %8 = vector.multi_reduction <add>, %3, %cst [1] : vector<16x128xf32> to vector<16xf32>
    %9 = vector.shape_cast %8 : vector<16xf32> to vector<16x1xf32>
    %cst_8 = arith.constant 1.280000e+02 : f32
    %10 = vector.broadcast %cst_8 : f32 to vector<16x1xf32>
    %11 = arith.divf %9, %10 : vector<16x1xf32>
    %12 = vector.broadcast %11 : vector<16x1xf32> to vector<16x128xf32>
    %13 = arith.subf %3, %12 : vector<16x128xf32>
    %14 = arith.mulf %13, %13 : vector<16x128xf32>
    %cst_9 = arith.constant dense<0.000000e+00> : vector<16xf32>
    %15 = vector.multi_reduction <add>, %14, %cst_9 [1] : vector<16x128xf32> to vector<16xf32>
    %16 = vector.shape_cast %15 : vector<16xf32> to vector<16x1xf32>
    %cst_10 = arith.constant 1.280000e+02 : f32
    %17 = vector.broadcast %cst_10 : f32 to vector<16x1xf32>
    %18 = arith.divf %16, %17 : vector<16x1xf32>
    %19 = vector.broadcast %11 : vector<16x1xf32> to vector<16x128xf32>
    %20 = arith.subf %3, %19 : vector<16x128xf32>
    %cst_11 = arith.constant 9.99999997E-7 : f32
    %21 = vector.broadcast %cst_11 : f32 to vector<16x1xf32>
    %22 = arith.addf %18, %21 : vector<16x1xf32>
    %23 = math.rsqrt %22 : vector<16x1xf32>
    %24 = vector.broadcast %23 : vector<16x1xf32> to vector<16x128xf32>
    %25 = arith.mulf %20, %24 : vector<16x128xf32>
    %26 = vector.broadcast %5 : vector<1x128xf32> to vector<16x128xf32>
    %27 = arith.mulf %25, %26 : vector<16x128xf32>
    %28 = vector.broadcast %7 : vector<1x128xf32> to vector<16x128xf32>
    %29 = arith.addf %27, %28 : vector<16x128xf32>
    %30 = arith.truncf %29 : vector<16x128xf32> to vector<16x128xbf16>
    %c0_12 = arith.constant 0 : index
    %c0_13 = arith.constant 0 : index
    %c0_14 = arith.constant 0 : index
    %31 = vector.load %arg7[%c0_12, %c0_13, %c0_14] : memref<1x128x384xbf16, #tpu.memory_space<vmem>>, vector<1x128x384xbf16>
    %32 = vector.shape_cast %31 : vector<1x128x384xbf16> to vector<128x384xbf16>
    %cst_15 = arith.constant dense<0.000000e+00> : vector<16x384xf32>
    %33 = tpu.matmul %30, %32, %cst_15 {dimension_numbers = #tpu.dot_dimension_numbers<[1], [0], [0], [1], [0, 0, 1, 1], [], []>} : vector<16x128xbf16>, vector<128x384xbf16>, vector<16x384xf32> -> vector<16x384xf32>
    %c0_16 = arith.constant 0 : index
    %c0_17 = arith.constant 0 : index
    %c0_18 = arith.constant 0 : index
    %34 = vector.load %arg8[%c0_16, %c0_17, %c0_18] : memref<1x1x384xf32, #tpu.memory_space<vmem>>, vector<1x1x384xf32>
    %35 = vector.shape_cast %34 : vector<1x1x384xf32> to vector<1x384xf32>
    %36 = vector.broadcast %35 : vector<1x384xf32> to vector<16x384xf32>
    %37 = arith.addf %33, %36 : vector<16x384xf32>
    %38 = tpu.iota {dimensions = array<i32: 1>} : vector<16x16xi32>
    %c9_i32 = arith.constant 9 : i32
    %39 = vector.broadcast %c9_i32 : i32 to vector<16x16xi32>
    %40 = arith.cmpi slt, %38, %39 : vector<16x16xi32>
    %c0_19 = arith.constant 0 : index
    %c0_20 = arith.constant 0 : index
    %c0_21 = arith.constant 0 : index
    %41 = vector.load %arg9[%c0_19, %c0_20, %c0_21] : memref<1x128x128xbf16, #tpu.memory_space<vmem>>, vector<1x128x128xbf16>
    %42 = vector.shape_cast %41 : vector<1x128x128xbf16> to vector<128x128xbf16>
    %cst_22 = arith.constant 0.000000e+00 : f32
    %43 = vector.broadcast %cst_22 : f32 to vector<16x128xf32>
    %44 = vector.extract_strided_slice %37 {offsets = [0, 0], sizes = [16, 32], strides = [1, 1]} : vector<16x384xf32> to vector<16x32xf32>
    %45 = arith.truncf %44 : vector<16x32xf32> to vector<16x32xbf16>
    %46 = vector.extract_strided_slice %37 {offsets = [0, 128], sizes = [16, 32], strides = [1, 1]} : vector<16x384xf32> to vector<16x32xf32>
    %47 = arith.truncf %46 : vector<16x32xf32> to vector<16x32xbf16>
    %48 = vector.extract_strided_slice %37 {offsets = [0, 256], sizes = [16, 32], strides = [1, 1]} : vector<16x384xf32> to vector<16x32xf32>
    %49 = arith.truncf %48 : vector<16x32xf32> to vector<16x32xbf16>
    %cst_23 = arith.constant dense<0.000000e+00> : vector<16x16xf32>
    %50 = tpu.matmul %45, %47, %cst_23 {dimension_numbers = #tpu.dot_dimension_numbers<[1], [1], [0], [0], [0, 0, 1, 0], [], []>} : vector<16x32xbf16>, vector<16x32xbf16>, vector<16x16xf32> -> vector<16x16xf32>
    %cst_24 = arith.constant 0.176776692 : f32
    %51 = vector.broadcast %cst_24 : f32 to vector<16x16xf32>
    %52 = arith.mulf %50, %51 : vector<16x16xf32>
    %cst_25 = arith.constant -1.000000e+30 : f32
    %53 = vector.broadcast %cst_25 : f32 to vector<16x16xf32>
    %54 = arith.select %40, %52, %53 : vector<16x16xi1>, vector<16x16xf32>
    %cst_26 = arith.constant dense<0xFF800000> : vector<16xf32>
    %55 = vector.multi_reduction <maximumf>, %54, %cst_26 [1] : vector<16x16xf32> to vector<16xf32>
    %56 = vector.shape_cast %55 : vector<16xf32> to vector<16x1xf32>
    %57 = vector.broadcast %56 : vector<16x1xf32> to vector<16x16xf32>
    %58 = arith.subf %54, %57 : vector<16x16xf32>
    %59 = math.exp %58 : vector<16x16xf32>
    %cst_27 = arith.constant dense<0.000000e+00> : vector<16xf32>
    %60 = vector.multi_reduction <add>, %59, %cst_27 [1] : vector<16x16xf32> to vector<16xf32>
    %61 = vector.shape_cast %60 : vector<16xf32> to vector<16x1xf32>
    %62 = tpu.reciprocal %61 {approx = true} : vector<16x1xf32> -> vector<16x1xf32>
    %63 = vector.broadcast %62 : vector<16x1xf32> to vector<16x16xf32>
    %64 = arith.mulf %59, %63 : vector<16x16xf32>
    %65 = arith.truncf %64 : vector<16x16xf32> to vector<16x16xbf16>
    %cst_28 = arith.constant dense<0.000000e+00> : vector<16x32xf32>
    %66 = tpu.matmul %65, %49, %cst_28 {dimension_numbers = #tpu.dot_dimension_numbers<[1], [0], [0], [1], [0, 0, 1, 1], [], []>} : vector<16x16xbf16>, vector<16x32xbf16>, vector<16x32xf32> -> vector<16x32xf32>
    %67 = arith.truncf %66 : vector<16x32xf32> to vector<16x32xbf16>
    %68 = vector.extract_strided_slice %42 {offsets = [0, 0], sizes = [32, 128], strides = [1, 1]} : vector<128x128xbf16> to vector<32x128xbf16>
    %cst_29 = arith.constant dense<0.000000e+00> : vector<16x128xf32>
    %69 = tpu.matmul %67, %68, %cst_29 {dimension_numbers = #tpu.dot_dimension_numbers<[1], [0], [0], [1], [0, 0, 1, 1], [], []>} : vector<16x32xbf16>, vector<32x128xbf16>, vector<16x128xf32> -> vector<16x128xf32>
    %70 = arith.addf %43, %69 : vector<16x128xf32>
    %71 = vector.extract_strided_slice %37 {offsets = [0, 32], sizes = [16, 32], strides = [1, 1]} : vector<16x384xf32> to vector<16x32xf32>
    %72 = arith.truncf %71 : vector<16x32xf32> to vector<16x32xbf16>
    %73 = vector.extract_strided_slice %37 {offsets = [0, 160], sizes = [16, 32], strides = [1, 1]} : vector<16x384xf32> to vector<16x32xf32>
    %74 = arith.truncf %73 : vector<16x32xf32> to vector<16x32xbf16>
    %75 = vector.extract_strided_slice %37 {offsets = [0, 288], sizes = [16, 32], strides = [1, 1]} : vector<16x384xf32> to vector<16x32xf32>
    %76 = arith.truncf %75 : vector<16x32xf32> to vector<16x32xbf16>
    %cst_30 = arith.constant dense<0.000000e+00> : vector<16x16xf32>
    %77 = tpu.matmul %72, %74, %cst_30 {dimension_numbers = #tpu.dot_dimension_numbers<[1], [1], [0], [0], [0, 0, 1, 0], [], []>} : vector<16x32xbf16>, vector<16x32xbf16>, vector<16x16xf32> -> vector<16x16xf32>
    %cst_31 = arith.constant 0.176776692 : f32
    %78 = vector.broadcast %cst_31 : f32 to vector<16x16xf32>
    %79 = arith.mulf %77, %78 : vector<16x16xf32>
    %cst_32 = arith.constant -1.000000e+30 : f32
    %80 = vector.broadcast %cst_32 : f32 to vector<16x16xf32>
    %81 = arith.select %40, %79, %80 : vector<16x16xi1>, vector<16x16xf32>
    %cst_33 = arith.constant dense<0xFF800000> : vector<16xf32>
    %82 = vector.multi_reduction <maximumf>, %81, %cst_33 [1] : vector<16x16xf32> to vector<16xf32>
    %83 = vector.shape_cast %82 : vector<16xf32> to vector<16x1xf32>
    %84 = vector.broadcast %83 : vector<16x1xf32> to vector<16x16xf32>
    %85 = arith.subf %81, %84 : vector<16x16xf32>
    %86 = math.exp %85 : vector<16x16xf32>
    %cst_34 = arith.constant dense<0.000000e+00> : vector<16xf32>
    %87 = vector.multi_reduction <add>, %86, %cst_34 [1] : vector<16x16xf32> to vector<16xf32>
    %88 = vector.shape_cast %87 : vector<16xf32> to vector<16x1xf32>
    %89 = tpu.reciprocal %88 {approx = true} : vector<16x1xf32> -> vector<16x1xf32>
    %90 = vector.broadcast %89 : vector<16x1xf32> to vector<16x16xf32>
    %91 = arith.mulf %86, %90 : vector<16x16xf32>
    %92 = arith.truncf %91 : vector<16x16xf32> to vector<16x16xbf16>
    %cst_35 = arith.constant dense<0.000000e+00> : vector<16x32xf32>
    %93 = tpu.matmul %92, %76, %cst_35 {dimension_numbers = #tpu.dot_dimension_numbers<[1], [0], [0], [1], [0, 0, 1, 1], [], []>} : vector<16x16xbf16>, vector<16x32xbf16>, vector<16x32xf32> -> vector<16x32xf32>
    %94 = arith.truncf %93 : vector<16x32xf32> to vector<16x32xbf16>
    %95 = vector.extract_strided_slice %42 {offsets = [32, 0], sizes = [32, 128], strides = [1, 1]} : vector<128x128xbf16> to vector<32x128xbf16>
    %cst_36 = arith.constant dense<0.000000e+00> : vector<16x128xf32>
    %96 = tpu.matmul %94, %95, %cst_36 {dimension_numbers = #tpu.dot_dimension_numbers<[1], [0], [0], [1], [0, 0, 1, 1], [], []>} : vector<16x32xbf16>, vector<32x128xbf16>, vector<16x128xf32> -> vector<16x128xf32>
    %97 = arith.addf %70, %96 : vector<16x128xf32>
    %98 = vector.extract_strided_slice %37 {offsets = [0, 64], sizes = [16, 32], strides = [1, 1]} : vector<16x384xf32> to vector<16x32xf32>
    %99 = arith.truncf %98 : vector<16x32xf32> to vector<16x32xbf16>
    %100 = vector.extract_strided_slice %37 {offsets = [0, 192], sizes = [16, 32], strides = [1, 1]} : vector<16x384xf32> to vector<16x32xf32>
    %101 = arith.truncf %100 : vector<16x32xf32> to vector<16x32xbf16>
    %102 = vector.extract_strided_slice %37 {offsets = [0, 320], sizes = [16, 32], strides = [1, 1]} : vector<16x384xf32> to vector<16x32xf32>
    %103 = arith.truncf %102 : vector<16x32xf32> to vector<16x32xbf16>
    %cst_37 = arith.constant dense<0.000000e+00> : vector<16x16xf32>
    %104 = tpu.matmul %99, %101, %cst_37 {dimension_numbers = #tpu.dot_dimension_numbers<[1], [1], [0], [0], [0, 0, 1, 0], [], []>} : vector<16x32xbf16>, vector<16x32xbf16>, vector<16x16xf32> -> vector<16x16xf32>
    %cst_38 = arith.constant 0.176776692 : f32
    %105 = vector.broadcast %cst_38 : f32 to vector<16x16xf32>
    %106 = arith.mulf %104, %105 : vector<16x16xf32>
    %cst_39 = arith.constant -1.000000e+30 : f32
    %107 = vector.broadcast %cst_39 : f32 to vector<16x16xf32>
    %108 = arith.select %40, %106, %107 : vector<16x16xi1>, vector<16x16xf32>
    %cst_40 = arith.constant dense<0xFF800000> : vector<16xf32>
    %109 = vector.multi_reduction <maximumf>, %108, %cst_40 [1] : vector<16x16xf32> to vector<16xf32>
    %110 = vector.shape_cast %109 : vector<16xf32> to vector<16x1xf32>
    %111 = vector.broadcast %110 : vector<16x1xf32> to vector<16x16xf32>
    %112 = arith.subf %108, %111 : vector<16x16xf32>
    %113 = math.exp %112 : vector<16x16xf32>
    %cst_41 = arith.constant dense<0.000000e+00> : vector<16xf32>
    %114 = vector.multi_reduction <add>, %113, %cst_41 [1] : vector<16x16xf32> to vector<16xf32>
    %115 = vector.shape_cast %114 : vector<16xf32> to vector<16x1xf32>
    %116 = tpu.reciprocal %115 {approx = true} : vector<16x1xf32> -> vector<16x1xf32>
    %117 = vector.broadcast %116 : vector<16x1xf32> to vector<16x16xf32>
    %118 = arith.mulf %113, %117 : vector<16x16xf32>
    %119 = arith.truncf %118 : vector<16x16xf32> to vector<16x16xbf16>
    %cst_42 = arith.constant dense<0.000000e+00> : vector<16x32xf32>
    %120 = tpu.matmul %119, %103, %cst_42 {dimension_numbers = #tpu.dot_dimension_numbers<[1], [0], [0], [1], [0, 0, 1, 1], [], []>} : vector<16x16xbf16>, vector<16x32xbf16>, vector<16x32xf32> -> vector<16x32xf32>
    %121 = arith.truncf %120 : vector<16x32xf32> to vector<16x32xbf16>
    %122 = vector.extract_strided_slice %42 {offsets = [64, 0], sizes = [32, 128], strides = [1, 1]} : vector<128x128xbf16> to vector<32x128xbf16>
    %cst_43 = arith.constant dense<0.000000e+00> : vector<16x128xf32>
    %123 = tpu.matmul %121, %122, %cst_43 {dimension_numbers = #tpu.dot_dimension_numbers<[1], [0], [0], [1], [0, 0, 1, 1], [], []>} : vector<16x32xbf16>, vector<32x128xbf16>, vector<16x128xf32> -> vector<16x128xf32>
    %124 = arith.addf %97, %123 : vector<16x128xf32>
    %125 = vector.extract_strided_slice %37 {offsets = [0, 96], sizes = [16, 32], strides = [1, 1]} : vector<16x384xf32> to vector<16x32xf32>
    %126 = arith.truncf %125 : vector<16x32xf32> to vector<16x32xbf16>
    %127 = vector.extract_strided_slice %37 {offsets = [0, 224], sizes = [16, 32], strides = [1, 1]} : vector<16x384xf32> to vector<16x32xf32>
    %128 = arith.truncf %127 : vector<16x32xf32> to vector<16x32xbf16>
    %129 = vector.extract_strided_slice %37 {offsets = [0, 352], sizes = [16, 32], strides = [1, 1]} : vector<16x384xf32> to vector<16x32xf32>
    %130 = arith.truncf %129 : vector<16x32xf32> to vector<16x32xbf16>
    %cst_44 = arith.constant dense<0.000000e+00> : vector<16x16xf32>
    %131 = tpu.matmul %126, %128, %cst_44 {dimension_numbers = #tpu.dot_dimension_numbers<[1], [1], [0], [0], [0, 0, 1, 0], [], []>} : vector<16x32xbf16>, vector<16x32xbf16>, vector<16x16xf32> -> vector<16x16xf32>
    %cst_45 = arith.constant 0.176776692 : f32
    %132 = vector.broadcast %cst_45 : f32 to vector<16x16xf32>
    %133 = arith.mulf %131, %132 : vector<16x16xf32>
    %cst_46 = arith.constant -1.000000e+30 : f32
    %134 = vector.broadcast %cst_46 : f32 to vector<16x16xf32>
    %135 = arith.select %40, %133, %134 : vector<16x16xi1>, vector<16x16xf32>
    %cst_47 = arith.constant dense<0xFF800000> : vector<16xf32>
    %136 = vector.multi_reduction <maximumf>, %135, %cst_47 [1] : vector<16x16xf32> to vector<16xf32>
    %137 = vector.shape_cast %136 : vector<16xf32> to vector<16x1xf32>
    %138 = vector.broadcast %137 : vector<16x1xf32> to vector<16x16xf32>
    %139 = arith.subf %135, %138 : vector<16x16xf32>
    %140 = math.exp %139 : vector<16x16xf32>
    %cst_48 = arith.constant dense<0.000000e+00> : vector<16xf32>
    %141 = vector.multi_reduction <add>, %140, %cst_48 [1] : vector<16x16xf32> to vector<16xf32>
    %142 = vector.shape_cast %141 : vector<16xf32> to vector<16x1xf32>
    %143 = tpu.reciprocal %142 {approx = true} : vector<16x1xf32> -> vector<16x1xf32>
    %144 = vector.broadcast %143 : vector<16x1xf32> to vector<16x16xf32>
    %145 = arith.mulf %140, %144 : vector<16x16xf32>
    %146 = arith.truncf %145 : vector<16x16xf32> to vector<16x16xbf16>
    %cst_49 = arith.constant dense<0.000000e+00> : vector<16x32xf32>
    %147 = tpu.matmul %146, %130, %cst_49 {dimension_numbers = #tpu.dot_dimension_numbers<[1], [0], [0], [1], [0, 0, 1, 1], [], []>} : vector<16x16xbf16>, vector<16x32xbf16>, vector<16x32xf32> -> vector<16x32xf32>
    %148 = arith.truncf %147 : vector<16x32xf32> to vector<16x32xbf16>
    %149 = vector.extract_strided_slice %42 {offsets = [96, 0], sizes = [32, 128], strides = [1, 1]} : vector<128x128xbf16> to vector<32x128xbf16>
    %cst_50 = arith.constant dense<0.000000e+00> : vector<16x128xf32>
    %150 = tpu.matmul %148, %149, %cst_50 {dimension_numbers = #tpu.dot_dimension_numbers<[1], [0], [0], [1], [0, 0, 1, 1], [], []>} : vector<16x32xbf16>, vector<32x128xbf16>, vector<16x128xf32> -> vector<16x128xf32>
    %151 = arith.addf %124, %150 : vector<16x128xf32>
    %152 = arith.addf %3, %151 : vector<16x128xf32>
    %c0_51 = arith.constant 0 : index
    %c0_52 = arith.constant 0 : index
    %c0_53 = arith.constant 0 : index
    %153 = vector.load %arg10[%c0_51, %c0_52, %c0_53] : memref<1x1x128xf32, #tpu.memory_space<vmem>>, vector<1x1x128xf32>
    %154 = vector.shape_cast %153 : vector<1x1x128xf32> to vector<1x128xf32>
    %155 = vector.broadcast %154 : vector<1x128xf32> to vector<16x128xf32>
    %156 = arith.addf %152, %155 : vector<16x128xf32>
    %c0_54 = arith.constant 0 : index
    %c0_55 = arith.constant 0 : index
    %c0_56 = arith.constant 0 : index
    %157 = vector.load %arg11[%c0_54, %c0_55, %c0_56] : memref<1x1x128xf32, #tpu.memory_space<vmem>>, vector<1x1x128xf32>
    %158 = vector.shape_cast %157 : vector<1x1x128xf32> to vector<1x128xf32>
    %c0_57 = arith.constant 0 : index
    %c0_58 = arith.constant 0 : index
    %c0_59 = arith.constant 0 : index
    %159 = vector.load %arg12[%c0_57, %c0_58, %c0_59] : memref<1x1x128xf32, #tpu.memory_space<vmem>>, vector<1x1x128xf32>
    %160 = vector.shape_cast %159 : vector<1x1x128xf32> to vector<1x128xf32>
    %cst_60 = arith.constant dense<0.000000e+00> : vector<16xf32>
    %161 = vector.multi_reduction <add>, %156, %cst_60 [1] : vector<16x128xf32> to vector<16xf32>
    %162 = vector.shape_cast %161 : vector<16xf32> to vector<16x1xf32>
    %cst_61 = arith.constant 1.280000e+02 : f32
    %163 = vector.broadcast %cst_61 : f32 to vector<16x1xf32>
    %164 = arith.divf %162, %163 : vector<16x1xf32>
    %165 = vector.broadcast %164 : vector<16x1xf32> to vector<16x128xf32>
    %166 = arith.subf %156, %165 : vector<16x128xf32>
    %167 = arith.mulf %166, %166 : vector<16x128xf32>
    %cst_62 = arith.constant dense<0.000000e+00> : vector<16xf32>
    %168 = vector.multi_reduction <add>, %167, %cst_62 [1] : vector<16x128xf32> to vector<16xf32>
    %169 = vector.shape_cast %168 : vector<16xf32> to vector<16x1xf32>
    %cst_63 = arith.constant 1.280000e+02 : f32
    %170 = vector.broadcast %cst_63 : f32 to vector<16x1xf32>
    %171 = arith.divf %169, %170 : vector<16x1xf32>
    %172 = vector.broadcast %164 : vector<16x1xf32> to vector<16x128xf32>
    %173 = arith.subf %156, %172 : vector<16x128xf32>
    %cst_64 = arith.constant 9.99999997E-7 : f32
    %174 = vector.broadcast %cst_64 : f32 to vector<16x1xf32>
    %175 = arith.addf %171, %174 : vector<16x1xf32>
    %176 = math.rsqrt %175 : vector<16x1xf32>
    %177 = vector.broadcast %176 : vector<16x1xf32> to vector<16x128xf32>
    %178 = arith.mulf %173, %177 : vector<16x128xf32>
    %179 = vector.broadcast %158 : vector<1x128xf32> to vector<16x128xf32>
    %180 = arith.mulf %178, %179 : vector<16x128xf32>
    %181 = vector.broadcast %160 : vector<1x128xf32> to vector<16x128xf32>
    %182 = arith.addf %180, %181 : vector<16x128xf32>
    %183 = arith.truncf %182 : vector<16x128xf32> to vector<16x128xbf16>
    %c0_65 = arith.constant 0 : index
    %c0_66 = arith.constant 0 : index
    %c0_67 = arith.constant 0 : index
    %184 = vector.load %arg13[%c0_65, %c0_66, %c0_67] : memref<1x128x512xbf16, #tpu.memory_space<vmem>>, vector<1x128x512xbf16>
    %185 = vector.shape_cast %184 : vector<1x128x512xbf16> to vector<128x512xbf16>
    %cst_68 = arith.constant dense<0.000000e+00> : vector<16x512xf32>
    %186 = tpu.matmul %183, %185, %cst_68 {dimension_numbers = #tpu.dot_dimension_numbers<[1], [0], [0], [1], [0, 0, 1, 1], [], []>} : vector<16x128xbf16>, vector<128x512xbf16>, vector<16x512xf32> -> vector<16x512xf32>
    %c0_69 = arith.constant 0 : index
    %c0_70 = arith.constant 0 : index
    %c0_71 = arith.constant 0 : index
    %187 = vector.load %arg14[%c0_69, %c0_70, %c0_71] : memref<1x1x512xf32, #tpu.memory_space<vmem>>, vector<1x1x512xf32>
    %188 = vector.shape_cast %187 : vector<1x1x512xf32> to vector<1x512xf32>
    %189 = vector.broadcast %188 : vector<1x512xf32> to vector<16x512xf32>
    %190 = arith.addf %186, %189 : vector<16x512xf32>
    %cst_72 = arith.constant 5.000000e-01 : f32
    %191 = vector.broadcast %cst_72 : f32 to vector<16x512xf32>
    %192 = arith.mulf %191, %190 : vector<16x512xf32>
    %cst_73 = arith.constant 4.471500e-02 : f32
    %193 = vector.broadcast %cst_73 : f32 to vector<16x512xf32>
    %194 = arith.mulf %193, %190 : vector<16x512xf32>
    %195 = arith.mulf %194, %190 : vector<16x512xf32>
    %196 = arith.mulf %195, %190 : vector<16x512xf32>
    %197 = arith.addf %190, %196 : vector<16x512xf32>
    %cst_74 = arith.constant 0.797884583 : f32
    %198 = vector.broadcast %cst_74 : f32 to vector<16x512xf32>
    %199 = arith.mulf %198, %197 : vector<16x512xf32>
    %200 = math.tanh %199 : vector<16x512xf32>
    %cst_75 = arith.constant 1.000000e+00 : f32
    %201 = vector.broadcast %cst_75 : f32 to vector<16x512xf32>
    %202 = arith.addf %201, %200 : vector<16x512xf32>
    %203 = arith.mulf %192, %202 : vector<16x512xf32>
    %204 = arith.truncf %203 : vector<16x512xf32> to vector<16x512xbf16>
    %c0_76 = arith.constant 0 : index
    %c0_77 = arith.constant 0 : index
    %c0_78 = arith.constant 0 : index
    %205 = vector.load %arg15[%c0_76, %c0_77, %c0_78] : memref<1x512x128xbf16, #tpu.memory_space<vmem>>, vector<1x512x128xbf16>
    %206 = vector.shape_cast %205 : vector<1x512x128xbf16> to vector<512x128xbf16>
    %cst_79 = arith.constant dense<0.000000e+00> : vector<16x128xf32>
    %207 = tpu.matmul %204, %206, %cst_79 {dimension_numbers = #tpu.dot_dimension_numbers<[1], [0], [0], [1], [0, 0, 1, 1], [], []>} : vector<16x512xbf16>, vector<512x128xbf16>, vector<16x128xf32> -> vector<16x128xf32>
    %208 = arith.addf %156, %207 : vector<16x128xf32>
    %c0_80 = arith.constant 0 : index
    %c0_81 = arith.constant 0 : index
    %c0_82 = arith.constant 0 : index
    %209 = vector.load %arg16[%c0_80, %c0_81, %c0_82] : memref<1x1x128xf32, #tpu.memory_space<vmem>>, vector<1x1x128xf32>
    %210 = vector.shape_cast %209 : vector<1x1x128xf32> to vector<1x128xf32>
    %211 = vector.broadcast %210 : vector<1x128xf32> to vector<16x128xf32>
    %212 = arith.addf %208, %211 : vector<16x128xf32>
    %c0_83 = arith.constant 0 : index
    %c0_84 = arith.constant 0 : index
    %213 = vector.load %arg20[%c0_83, %c0_84] : memref<16x128xf32, #tpu.memory_space<vmem>>, vector<16x128xf32>
    tpu.vector_store %arg20[%c0_83, %c0_84], %212 {strides = array<i32>} : memref<16x128xf32, #tpu.memory_space<vmem>>, vector<16x128xf32>,
    %c0_i32_85 = arith.constant 0 : i32
    %214 = arith.cmpi sgt, %arg1, %c0_i32_85 : i32
    %215 = arith.extui %214 : i1 to i32
    %c0_i32_86 = arith.constant 0 : i32
    %216 = arith.cmpi ne, %215, %c0_i32_86 : i32
    scf.if %216 {
      %c0_88 = arith.constant 0 : index
      %c0_89 = arith.constant 0 : index
      %220 = vector.load %arg21[%c0_88, %c0_89] : memref<16x128xf32, #tpu.memory_space<vmem>>, vector<16x128xf32>
      %c0_90 = arith.constant 0 : index
      %c0_91 = arith.constant 0 : index
      %221 = vector.load %arg17[%c0_90, %c0_91] : memref<1x128xf32, #tpu.memory_space<vmem>>, vector<1x128xf32>
      %c0_92 = arith.constant 0 : index
      %c0_93 = arith.constant 0 : index
      %222 = vector.load %arg18[%c0_92, %c0_93] : memref<1x128xf32, #tpu.memory_space<vmem>>, vector<1x128xf32>
      %cst_94 = arith.constant dense<0.000000e+00> : vector<16xf32>
      %223 = vector.multi_reduction <add>, %212, %cst_94 [1] : vector<16x128xf32> to vector<16xf32>
      %224 = vector.shape_cast %223 : vector<16xf32> to vector<16x1xf32>
      %cst_95 = arith.constant 1.280000e+02 : f32
      %225 = vector.broadcast %cst_95 : f32 to vector<16x1xf32>
      %226 = arith.divf %224, %225 : vector<16x1xf32>
      %227 = vector.broadcast %226 : vector<16x1xf32> to vector<16x128xf32>
      %228 = arith.subf %212, %227 : vector<16x128xf32>
      %229 = arith.mulf %228, %228 : vector<16x128xf32>
      %cst_96 = arith.constant dense<0.000000e+00> : vector<16xf32>
      %230 = vector.multi_reduction <add>, %229, %cst_96 [1] : vector<16x128xf32> to vector<16xf32>
      %231 = vector.shape_cast %230 : vector<16xf32> to vector<16x1xf32>
      %cst_97 = arith.constant 1.280000e+02 : f32
      %232 = vector.broadcast %cst_97 : f32 to vector<16x1xf32>
      %233 = arith.divf %231, %232 : vector<16x1xf32>
      %234 = vector.broadcast %226 : vector<16x1xf32> to vector<16x128xf32>
      %235 = arith.subf %212, %234 : vector<16x128xf32>
      %cst_98 = arith.constant 9.99999997E-7 : f32
      %236 = vector.broadcast %cst_98 : f32 to vector<16x1xf32>
      %237 = arith.addf %233, %236 : vector<16x1xf32>
      %238 = math.rsqrt %237 : vector<16x1xf32>
      %239 = vector.broadcast %238 : vector<16x1xf32> to vector<16x128xf32>
      %240 = arith.mulf %235, %239 : vector<16x128xf32>
      %241 = vector.broadcast %221 : vector<1x128xf32> to vector<16x128xf32>
      %242 = arith.mulf %240, %241 : vector<16x128xf32>
      %243 = vector.broadcast %222 : vector<1x128xf32> to vector<16x128xf32>
      %244 = arith.addf %242, %243 : vector<16x128xf32>
      %245 = arith.addf %220, %244 : vector<16x128xf32>
      %c0_99 = arith.constant 0 : index
      %c0_100 = arith.constant 0 : index
      %246 = vector.load %arg21[%c0_99, %c0_100] : memref<16x128xf32, #tpu.memory_space<vmem>>, vector<16x128xf32>
      tpu.vector_store %arg21[%c0_99, %c0_100], %245 {strides = array<i32>} : memref<16x128xf32, #tpu.memory_space<vmem>>, vector<16x128xf32>,
    } else {
    }
    %c2_i32 = arith.constant 2 : i32
    %217 = arith.cmpi eq, %arg1, %c2_i32 : i32
    %218 = arith.extui %217 : i1 to i32
    %c0_i32_87 = arith.constant 0 : i32
    %219 = arith.cmpi ne, %218, %c0_i32_87 : i32
    scf.if %219 {
      %c0_88 = arith.constant 0 : index
      %c0_89 = arith.constant 0 : index
      %220 = vector.load %arg21[%c0_88, %c0_89] : memref<16x128xf32, #tpu.memory_space<vmem>>, vector<16x128xf32>
      %221 = vector.extract_strided_slice %220 {offsets = [1, 0], sizes = [8, 128], strides = [1, 1]} : vector<16x128xf32> to vector<8x128xf32>
      %cst_90 = arith.constant 5.000000e-01 : f32
      %222 = vector.broadcast %cst_90 : f32 to vector<8x128xf32>
      %223 = arith.mulf %221, %222 : vector<8x128xf32>
      %c0_91 = arith.constant 0 : index
      %c0_92 = arith.constant 0 : index
      %c0_93 = arith.constant 0 : index
      %224 = vector.load %arg19[%c0_91, %c0_92, %c0_93] : memref<1x8x128xf32, #tpu.memory_space<vmem>>, vector<1x8x128xf32>
      %225 = vector.shape_cast %224 : vector<1x8x128xf32> to vector<8x128xf32>
      %226 = vector.shape_cast %223 : vector<8x128xf32> to vector<1x8x128xf32>
      tpu.vector_store %arg19[%c0_91, %c0_92, %c0_93], %226 {strides = array<i32>} : memref<1x8x128xf32, #tpu.memory_space<vmem>>, vector<1x8x128xf32>,
    } else {
    }
    return
  }
  func.func @transform_0(%arg0: i32, %arg1: i32) -> (i32, i32, i32) {
    %c0_i32 = arith.constant 0 : i32
    %c0_i32_0 = arith.constant 0 : i32
    %c0_i32_1 = arith.constant 0 : i32
    return %arg0, %c0_i32, %c0_i32_0 : i32, i32, i32
  }
  func.func @transform_1(%arg0: i32, %arg1: i32) -> (i32, i32) {
    %c0_i32 = arith.constant 0 : i32
    %c0_i32_0 = arith.constant 0 : i32
    %c0_i32_1 = arith.constant 0 : i32
    return %c0_i32, %c0_i32_0 : i32, i32
  }
  func.func @transform_2(%arg0: i32, %arg1: i32) -> (i32, i32) {
    %c0_i32 = arith.constant 0 : i32
    %c0_i32_0 = arith.constant 0 : i32
    %c0_i32_1 = arith.constant 0 : i32
    return %c0_i32, %c0_i32_0 : i32, i32
  }
  func.func @transform_3(%arg0: i32, %arg1: i32) -> (i32, i32, i32) {
    %c0_i32 = arith.constant 0 : i32
    %c0_i32_0 = arith.constant 0 : i32
    %c0_i32_1 = arith.constant 0 : i32
    return %arg1, %c0_i32, %c0_i32_0 : i32, i32, i32
  }
  func.func @transform_4(%arg0: i32, %arg1: i32) -> (i32, i32, i32) {
    %c0_i32 = arith.constant 0 : i32
    %c0_i32_0 = arith.constant 0 : i32
    %c0_i32_1 = arith.constant 0 : i32
    return %arg1, %c0_i32, %c0_i32_0 : i32, i32, i32
  }
  func.func @transform_5(%arg0: i32, %arg1: i32) -> (i32, i32, i32) {
    %c0_i32 = arith.constant 0 : i32
    %c0_i32_0 = arith.constant 0 : i32
    %c0_i32_1 = arith.constant 0 : i32
    return %arg1, %c0_i32, %c0_i32_0 : i32, i32, i32
  }
  func.func @transform_6(%arg0: i32, %arg1: i32) -> (i32, i32, i32) {
    %c0_i32 = arith.constant 0 : i32
    %c0_i32_0 = arith.constant 0 : i32
    %c0_i32_1 = arith.constant 0 : i32
    return %arg1, %c0_i32, %c0_i32_0 : i32, i32, i32
  }
  func.func @transform_7(%arg0: i32, %arg1: i32) -> (i32, i32, i32) {
    %c0_i32 = arith.constant 0 : i32
    %c0_i32_0 = arith.constant 0 : i32
    %c0_i32_1 = arith.constant 0 : i32
    return %arg1, %c0_i32, %c0_i32_0 : i32, i32, i32
  }
  func.func @transform_8(%arg0: i32, %arg1: i32) -> (i32, i32, i32) {
    %c0_i32 = arith.constant 0 : i32
    %c0_i32_0 = arith.constant 0 : i32
    %c0_i32_1 = arith.constant 0 : i32
    return %arg1, %c0_i32, %c0_i32_0 : i32, i32, i32
  }
  func.func @transform_9(%arg0: i32, %arg1: i32) -> (i32, i32, i32) {
    %c0_i32 = arith.constant 0 : i32
    %c0_i32_0 = arith.constant 0 : i32
    %c0_i32_1 = arith.constant 0 : i32
    return %arg1, %c0_i32, %c0_i32_0 : i32, i32, i32
  }
  func.func @transform_10(%arg0: i32, %arg1: i32) -> (i32, i32, i32) {
    %c0_i32 = arith.constant 0 : i32
    %c0_i32_0 = arith.constant 0 : i32
    %c0_i32_1 = arith.constant 0 : i32
    return %arg1, %c0_i32, %c0_i32_0 : i32, i32, i32
  }
  func.func @transform_11(%arg0: i32, %arg1: i32) -> (i32, i32, i32) {
    %c0_i32 = arith.constant 0 : i32
    %c0_i32_0 = arith.constant 0 : i32
    %c0_i32_1 = arith.constant 0 : i32
    return %arg1, %c0_i32, %c0_i32_0 : i32, i32, i32
  }
  func.func @transform_12(%arg0: i32, %arg1: i32) -> (i32, i32, i32) {
    %c0_i32 = arith.constant 0 : i32
    %c0_i32_0 = arith.constant 0 : i32
    %c0_i32_1 = arith.constant 0 : i32
    return %arg1, %c0_i32, %c0_i32_0 : i32, i32, i32
  }
  func.func @transform_13(%arg0: i32, %arg1: i32) -> (i32, i32, i32) {
    %c0_i32 = arith.constant 0 : i32
    %c0_i32_0 = arith.constant 0 : i32
    %c0_i32_1 = arith.constant 0 : i32
    return %arg1, %c0_i32, %c0_i32_0 : i32, i32, i32
  }
  func.func @transform_14(%arg0: i32, %arg1: i32) -> (i32, i32, i32) {
    %c0_i32 = arith.constant 0 : i32
    %c0_i32_0 = arith.constant 0 : i32
    %c0_i32_1 = arith.constant 0 : i32
    return %arg1, %c0_i32, %c0_i32_0 : i32, i32, i32
  }
  func.func @transform_15(%arg0: i32, %arg1: i32) -> (i32, i32) {
    %c0_i32 = arith.constant 0 : i32
    %c0_i32_0 = arith.constant 0 : i32
    %c0_i32_1 = arith.constant 0 : i32
    return %c0_i32, %c0_i32_0 : i32, i32
  }
  func.func @transform_16(%arg0: i32, %arg1: i32) -> (i32, i32) {
    %c0_i32 = arith.constant 0 : i32
    %c0_i32_0 = arith.constant 0 : i32
    %c0_i32_1 = arith.constant 0 : i32
    return %c0_i32, %c0_i32_0 : i32, i32
  }
  func.func @transform_17(%arg0: i32, %arg1: i32) -> (i32, i32, i32) {
    %c0_i32 = arith.constant 0 : i32
    %c0_i32_0 = arith.constant 0 : i32
    %c0_i32_1 = arith.constant 0 : i32
    return %arg0, %c0_i32, %c0_i32_0 : i32, i32, i32
  }
}

</mosaic_0001>

<bundles_post_ra>
// kernel: audiomae_forward.1
= control target key start
LH: loop header
LB: loop body
LE: loop exit
PB: predicated region body
PF: predicated region fallthrough
CT: control target
= control target key end

     0   :  { %s4329_s0 = inlined_call_operand.vmem [shape: f32[2,16,64], index: 0, kind: input, shape index: {}]   ;;  %s4330_s1 = inlined_call_operand.vmem [shape: bf16[64,128], index: 1, kind: input, shape index: {}]   ;;  %s4331_s2 = inlined_call_operand.vmem [shape: f32[16,128], index: 2, kind: input, shape index: {}]   ;;  %s4332_s3 = inlined_call_operand.vmem [shape: f32[3,1,128], index: 3, kind: input, shape index: {}]   ;;  %s4333_s4 = inlined_call_operand.vmem [shape: f32[3,1,128], index: 4, kind: input, shape index: {}]   ;;  %s4334_s5 = inlined_call_operand.vmem [shape: bf16[3,128,384], index: 5, kind: input, shape index: {}]   ;;  %s4335_s6 = inlined_call_operand.vmem [shape: f32[3,1,384], index: 6, kind: input, shape index: {}]   ;;  %s4336_s7 = inlined_call_operand.vmem [shape: bf16[3,128,128], index: 7, kind: input, shape index: {}]   ;;  %s4337_s8 = inlined_call_operand.vmem [shape: f32[3,1,128], index: 8, kind: input, shape index: {}]   ;;  %s4338_s9 = inlined_call_operand.vmem [shape: f32[3,1,128], index: 9, kind: input, shape index: {}]   ;;  %s4339_s10 = inlined_call_operand.vmem [shape: f32[3,1,128], index: 10, kind: input, shape index: {}]   ;;  %s4340_s11 = inlined_call_operand.vmem [shape: bf16[3,128,512], index: 11, kind: input, shape index: {}]   ;;  %s4341_s12 = inlined_call_operand.vmem [shape: f32[3,1,512], index: 12, kind: input, shape index: {}]   ;;  %s4342_s13 = inlined_call_operand.vmem [shape: bf16[3,512,128], index: 13, kind: input, shape index: {}]   ;;  %s4343_s14 = inlined_call_operand.vmem [shape: f32[3,1,128], index: 14, kind: input, shape index: {}]   ;;  %s4344_s15 = inlined_call_operand.vmem [shape: f32[1,128], index: 15, kind: input, shape index: {}]   ;;  %s4345_s16 = inlined_call_operand.vmem [shape: f32[1,128], index: 16, kind: input, shape index: {}]   ;;  %s4346_s17 = inlined_call_operand.hbm [shape: f32[2,8,128], index: 17, kind: output, shape index: {}]  }
   0x1   :  { %4364 = sst [smem:[#allocation20_spill]] %s4329_s0 }
   0x2   :  { %4365 = sst [smem:[#allocation21_spill]] %s4330_s1 }
   0x3   :  { %4366 = sst [smem:[#allocation22_spill]] %s4331_s2 }
   0x4   :  { %4367 = sst [smem:[#allocation23_spill]] %s4333_s4 }
   0x5   :  { %4368 = sst [smem:[#allocation24_spill]] %s4334_s5 }
   0x6   :  { %4369 = sst [smem:[#allocation25_spill]] %s4335_s6 }
   0x7   :  { %4370 = sst [smem:[#allocation26_spill]] %s4336_s7 }
   0x8   :  { %4371 = sst [smem:[#allocation27_spill]] %s4344_s15 }
   0x9   :  { %4372 = sst [smem:[#allocation28_spill]] %s4345_s16 }
   0xa   :  { %4373 = sst [smem:[#allocation29_spill]] %s4346_s17 }
   0xb   :  { %22 = vsyncpa [#allocation5], 0 }
   0xc   :  { %24 = vsyncpa [#allocation5 + $0x1], 0  ;;  %s3760_s24 = smov 0   ;;  %s3762_s25 = smov 0  }
   0xd   :  { %s3764_s26 = smov 0   ;;  %s3766_s27 = smov 0  }
   0xe   :  { %s3768_s28 = smov 0   ;;  %s3770_s29 = smov 0  }
   0xf   :  { %s3772_s0 = smov 0   ;;  %s3774_s30 = smov 0  }
  0x10 LB: > { %4374 = sst [smem:[#allocation7_spill]] %s3631_s24  ;;  %s2954_s18 = sadd.s32 4294967295, %s3659_s30   ;;  %s3659_s30 = sphi %s3774_s30, %s30_s30   ;;  %s3655_s0 = sphi %s3772_s0, %s4423_s0   ;;  %s3651_s29 = sphi %s3770_s29, %s4422_s29   ;;  %s3647_s28 = sphi %s3768_s28, %s4421_s28   ;;  %s3643_s27 = sphi %s3766_s27, %s4420_s27   ;;  %s3639_s26 = sphi %s3764_s26, %s4419_s26   ;;  %s3635_s25 = sphi %s3762_s25, %s4418_s25   ;;  %s3631_s24 = sphi %s3760_s24, %s4417_s24  }
  0x11   : > { %4375 = sst [smem:[#allocation8_spill]] %s3635_s25  ;;  %s2955_s19 = sadd.s32 4294967294, %s3659_s30  }
  0x12   : > { %4376 = sst [smem:[#allocation9_spill]] %s3639_s26  ;;  %s39_s1 = sadd.s32 1, %s3651_s29 }
  0x13   : > { %4377 = sst [smem:[#allocation10_spill]] %s3643_s27  ;;  %p40_p0 = scmp.ge.s32.totalorder %s39_s1, 3 }
  0x14   : > { %4378 = sst [smem:[#allocation11_spill]] %s3647_s28  ;;  %s42_s20 = sadd.s32 1, %s3655_s0 }
  0x15   : > { %4379 = sst [smem:[#allocation12_spill]] %s3651_s29  ;;  %p481_p1 = scmp.ne.s32.totalorder %s3639_s26, %s3635_s25 }
  0x16   : > { %4380 = sst [smem:[#allocation13_spill]] %s3655_s0  ;;  %p482_p2 = scmp.eq.s32.totalorder %s2954_s18, 5 }
  0x17   : > { %4381 = sst [smem:[#allocation14_spill]] %s3659_s30  ;;  %s4425_s1 = smov (%p40_p0, %s39_s1), 0 }
  0x18   : > { %4382 = sst [smem:[#allocation15_spill]] %s4425_s1  ;;  %s4427_s20 = smov (!%p40_p0, %s42_s20), %s3655_s0 }
  0x19   : > { %p3809_p3 = por %p482_p2, %p481_p1  ;;  %p487_p4 = scmp.ne.s32.totalorder %s3635_s25, %s3631_s24 }
  0x1a   : > { %p44_p5 = scmp.ge.s32.totalorder %s4427_s20, 2  ;;  %p488_p6 = scmp.eq.s32.totalorder %s2955_s19, 5 }
  0x1b   : > { %s4383_s21 = scalar_select %p3809_p3, 1, 0 }
  0x1c   : > { %p2958_p7 = scmp.ge.s32.totalorder %s3659_s30, 1  ;;  %p608_p8 = scmp.lt.s32.totalorder %s3659_s30, 7 }
  0x1d   : > { %4384 = sst [smem:[#allocation16_spill]] %s4383_s21  ;;  %s4429_s20 = smov (%p44_p5, %s4427_s20), 0 }
  0x1e   : > { %4385 = sst [smem:[#allocation17_spill]] %s4429_s20  ;;  %p3819_p9 = por %p488_p6, %p487_p4 }
  0x1f   : > { %p609_p10 = pnand %p2958_p7, %p608_p8  ;;  %s468_s23 = ssub.s32 %s3655_s0, %s4429_s20 }
  0x20   : > { %s4386_s22 = scalar_select %p3819_p9, 1, 0 }
  0x21   : > { %s471_s18 = sadd.s32 1, %s3639_s26  ;;  %p469_p11 = scmp.eq.s32.totalorder %s468_s23, 0 }
  0x22   : > { %4387 = sst [smem:[#allocation18_spill]] %s4386_s22  ;;  %612 = sbr.rel (%p609_p10) target bundleno = 4180 (0x1054), region = 88 }
  0x23   : > { %s3827_s1 = scalar_select %p469_p11, %s3639_s26, %s471_s18  }
  0x24   : > { %s4353_s19 = sand.u32 (!%p609_p10), 1, %s3635_s25   ;;  %p706_p12 = scmp.lt.s32.totalorder (!%p609_p10), %s3647_s28, 1 }
  0x25   : > { %4388 = sst [smem:[#allocation19_spill]] %s3827_s1  ;;  %s2959_s29 = sshll.u32 (!%p609_p10), %s4353_s19, 3 }
  0x26   : > { %p711_p13 = scmp.lt.s32.totalorder (!%p609_p10), %s3643_s27, 2  ;;  %s4389_s0 = sld [smem:[#allocation20_spill]] (!%p609_p10) }
  0x27   : > { %s707_s24 = scalar_select %p706_p12, %s3647_s28, 1 }
  0x28   : > { %s3836_s22 = scalar_select %p711_p13, %s3643_s27, 2 }
  0x29   : > { %s3098_s23 = sshll.u32 %s707_s24, 4  ;;  %s4391_s5 = sld [smem:[#allocation24_spill]] }
  0x2a   : > { %s3300_s28 = smul.u32 192, %s3836_s22  ;;  %s3099_s15 = sshll.u32 %s3836_s22, 6 }
  0x2b   : > { %s3301_s16 = smul.u32 3, %s3836_s22  ;;  %s4392_s7 = sld [smem:[#allocation26_spill]] }
  0x2c   : > { %s3841_s1 = scalar_lea.vmem %s4389_s0, %s3098_s23  ;;  %s4393_s6 = sld [smem:[#allocation25_spill]] }
  0x2d   : > { %s3100_s20 = sshll.u32 %s3836_s22, 8  ;;  %s4394_s2 = sld [smem:[#allocation10_spill]] }
  0x2e   : > { %s3886_s26 = scalar_lea.vmem %s4340_s11, %s3100_s20  ;;  %s3896_s4 = scalar_lea.vmem %s4342_s13, %s3100_s20 }
  0x2f   : > { %s3857_s24 = scalar_lea.vmem %s4391_s5, %s3300_s28  ;;  %s756_s28 = scalar_lea.vmem %s4343_s14, %s3836_s22 }
  0x30   : > { %s3902_s5 = scalar_lea.vmem [#allocation4], %s2959_s29 }
  0x31   : > { %s3862_s23 = scalar_lea.vmem %s4392_s7, %s3099_s15  ;;  %s2967_s15 = sshll.u32 %s3836_s22, 2 }
  0x32   : > { %s3867_s18 = scalar_lea.vmem %s4393_s6, %s3301_s16  ;;  %s3891_s17 = scalar_lea.vmem %s4341_s12, %s2967_s15 }
  0x33   : > { %p2970_p0 = scmp.ne.s32.totalorder %s4394_s2, 0 }
  0x34   : > { %s4395_s6 = sld [smem:[#allocation21_spill]] (!%p2970_p0) }
  0x35   : > { %761 = sbr.rel (%p2970_p0) target bundleno = 275 (0x113), region = 92  ;;  %s4396_s30 = sld [smem:[#allocation22_spill]] (!%p2970_p0) }
  0x3a   : > { %v3381_v0 = vld [vmem:[%s4395_s6 + $0x18] sm:$0xff]   ;;  %v3661_v1 = vmov 0.0   ;;  %v3382_v2 = vld [vmem:[%s4395_s6 + $0x10] sm:$0xff]   ;;  %vm3662_vm0 = vmmov 0   ;;  %v3383_v3 = vld [vmem:[%s4395_s6 + $0x8] sm:$0xff]   ;;  %vm799_vm1 = vcmask 523264  }
  0x3b   : > { %3188 = vmatprep.subr.bf16.mxu0 %v3661_v1  ;;  %846 = vst [vmem:[#allocation3 + $0x8] sm:$0xff] %v3661_v1  ;;  %847 = vst [vmem:[#allocation3] sm:$0xff] %v3661_v1  ;;  %3196 = vmatprep.mubr.msk.bf16.mxu0 %vm3662_vm0, %v3661_v1  ;;  %v3384_v4 = vld [vmem:[%s4395_s6] sm:$0xff]   ;;  %v763_v6 = vld [vmem:[%s3841_s1 + $0x8] sm:$0xff]  ;;  %s4397_s7 = smov %s4396_s30 }
  0x3c   : > { %3189 = vmatpush3.bf16.msra.mxu0 %v3381_v0  ;;  %v762_v5 = vld [vmem:[%s3841_s1] sm:$0xff]  ;;  %v774_v12 = vld [vmem:[%s4397_s7 + $0x8] sm:$0xff] }
  0x3d   : > { %3190 = vmatprep.subr.bf16.mxu0 %v3661_v1  ;;  %v764_v7 = vpack.c.bf16 %v763_v6, %v762_v5  ;;  %v773_v8 = vld [vmem:[%s4396_s30] sm:$0xff] }
  0x40   : > { %3191 = vmatpush3.bf16.msra.mxu0 %v3382_v2 }
  0x41   : > { %3192 = vmatprep.subr.bf16.mxu0 %v3661_v1 }
  0x44   : > { %3193 = vmatpush3.bf16.msra.mxu0 %v3383_v3 }
  0x45   : > { %3194 = vmatprep.subr.bf16.mxu0 %v3661_v1 }
  0x48   : > { %3195 = vmatpush3.bf16.msra.mxu0 %v3384_v4 }
  0x4b   : > { %3197 = vmatmul.mubr.msk.bf16.vlgmr.msra.gmra.mxu0 %vm799_vm1, %v764_v7 }
 0x10b   : > { %v837_v9 = vpop.f32.mrf.mxu0 }
 0x10c   : > { %v838_v10 = vadd.f32 %v837_v9, %v773_v8 }
 0x10d   : > { %v3198_v11 = vpop.f32.mrf.mxu0 }
 0x10e   : > { %844 = vst [vmem:[#allocation2] sm:$0xff] %v838_v10 }
 0x10f   : > { %v840_v13 = vpop.f32.mrf.mxu0 }
 0x110   : > { %v841_v14 = vadd.f32 %v840_v13, %v774_v12 }
 0x111   : > { %v3199_v15 = vpop.f32.mrf.mxu0 }
 0x112   : > { %845 = vst [vmem:[#allocation2 + $0x8] sm:$0xff] %v841_v14 }
 0x113 PF: > { %v3385_v18 = vld [vmem:[%s3857_s24 + $0xac] ss:$12 sps:$4 sm:$0xff]   ;;  %v3387_v19 = vld [vmem:[%s3857_s24 + $0xa8] ss:$12 sps:$4 sm:$0xff]   ;;  %v3663_v20 = vmov 0.0   ;;  %v3664_v43 = vmov 0   ;;  %s4398_s25 = scalar_lea.vmem %s4332_s3, %s3836_s22  ;;  %v926_v5 = vlaneseq  ;;  %s4402_s0 = scalar_lea.vmem %s4338_s9, %s3836_s22 }
 0x114   : > { %3200 = vmatprep.subr.bf16.mxu1 %v3663_v20  ;;  %v3388_v21 = vld [vmem:[%s3857_s24 + $0xb0] ss:$12 sps:$4 sm:$0xff]   ;;  %1069 = vmatprep.subr.bf16.mxu0 %v3385_v18  ;;  %v3389_v30 = vld [vmem:[%s3857_s24 + $0x94] ss:$12 sps:$4 sm:$0xff]   ;;  %v3392_v32 = vld [vmem:[%s3857_s24 + $0x98] ss:$12 sps:$4 sm:$0xff]  }
 0x115   : > { %v848_v16 = vld [vmem:[#allocation2] sm:$0xff]  ;;  %1070 = vmatpush1.bf16.msra.mxu0 %v3387_v19  ;;  %3201 = vmatpush3.bf16.msra.mxu1 %v3388_v21  ;;  %v3391_v31 = vld [vmem:[%s3857_s24 + $0x90] ss:$12 sps:$4 sm:$0xff]   ;;  %v3400_v38 = vld [vmem:[%s3857_s24 + $0x68] ss:$12 sps:$4 sm:$0xff]   ;;  %vm3665_vm2 = vmmov 0  }
 0x116   : > { %852 = vadd.xlane.f32.xlu0 %v848_v16  ;;  %3202 = vmatprep.subr.bf16.mxu1 %v3663_v20  ;;  %v3393_v33 = vld [vmem:[%s3857_s24 + $0x7c] ss:$12 sps:$4 sm:$0xff]   ;;  %v3395_v34 = vld [vmem:[%s3857_s24 + $0x78] ss:$12 sps:$4 sm:$0xff]   ;;  %v3396_v35 = vld [vmem:[%s3857_s24 + $0x80] ss:$12 sps:$4 sm:$0xff]  }
 0x117   : > { %1071 = vmatprep.subr.bf16.mxu0 %v3389_v30  ;;  %v3397_v36 = vld [vmem:[%s3857_s24 + $0x64] ss:$12 sps:$4 sm:$0xff]   ;;  %v3399_v37 = vld [vmem:[%s3857_s24 + $0x60] ss:$12 sps:$4 sm:$0xff]   ;;  %v3403_v40 = vld [vmem:[%s3857_s24 + $0x48] ss:$12 sps:$4 sm:$0xff]   ;;  %1101 = vmatprep.mubr.bf16.mxu0 %v3664_v43 }
 0x118   : > { %v3401_v39 = vld [vmem:[%s3857_s24 + $0x4c] ss:$12 sps:$4 sm:$0xff]   ;;  %v3404_v41 = vld [vmem:[%s3857_s24 + $0x50] ss:$12 sps:$4 sm:$0xff]   ;;  %v3405_v42 = vld [vmem:[%s3857_s24 + $0x34] ss:$12 sps:$4 sm:$0xff]   ;;  %3216 = vmatprep.mubr.msk.bf16.mxu1 %vm3665_vm2, %v3663_v20 }
 0x119   : > { %v849_v17 = vld [vmem:[#allocation2 + $0x8] sm:$0xff]  ;;  %1072 = vmatpush1.bf16.msra.mxu0 %v3391_v31  ;;  %3203 = vmatpush3.bf16.msra.mxu1 %v3392_v32  ;;  %v3407_v44 = vld [vmem:[%s3857_s24 + $0x30] ss:$12 sps:$4 sm:$0xff]   ;;  %v3408_v45 = vld [vmem:[%s3857_s24 + $0x38] ss:$12 sps:$4 sm:$0xff]   ;;  %s4399_s2 = sld [smem:[#allocation23_spill]] }
 0x11a   : > { %854 = vadd.xlane.f32.xlu0 %v849_v17  ;;  %3204 = vmatprep.subr.bf16.mxu1 %v3663_v20  ;;  %v3409_v46 = vld [vmem:[%s3857_s24 + $0x1c] ss:$12 sps:$4 sm:$0xff]   ;;  %v3411_v47 = vld [vmem:[%s3857_s24 + $0x18] ss:$12 sps:$4 sm:$0xff]   ;;  %v3412_v48 = vld [vmem:[%s3857_s24 + $0x20] ss:$12 sps:$4 sm:$0xff]  }
 0x11b   : > { %1073 = vmatprep.subr.bf16.mxu0 %v3393_v33  ;;  %v3413_v49 = vld [vmem:[%s3857_s24 + $0x4] ss:$12 sps:$4 sm:$0xff]   ;;  %v3415_v50 = vld [vmem:[%s3857_s24] ss:$12 sps:$4 sm:$0xff]   ;;  %v3416_v51 = vld [vmem:[%s3857_s24 + $0x8] ss:$12 sps:$4 sm:$0xff]  }
 0x11c   : > { %v2976_v60 = vld [vmem:[%s4398_s25] ss:$0 sm:$0xff]  ;;  %v3986_v6 = vshrl.u32 %v926_v5, 7  ;;  %vm1175_vm3 = vcmask 261120   ;;  %vm1227_vm5 = vcmask 130048   ;;  %s3667_s16 = smov 64   ;;  %s4403_s25 = scalar_lea.vmem %s4339_s10, %s3836_s22 }
 0x11d   : > { %1074 = vmatpush1.bf16.msra.mxu0 %v3395_v34  ;;  %3205 = vmatpush3.bf16.msra.mxu1 %v3396_v35  ;;  %v924_v9 = vld [vmem:[%s3867_s18] sm:$0x7]  ;;  %s3666_s18 = smov 96   ;;  %s3668_s19 = smov 32  }
 0x11e   : > { %3206 = vmatprep.subr.bf16.mxu1 %v3663_v20  ;;  %1075 = vmatprep.subr.bf16.mxu0 %v3397_v36  ;;  %v928_v7 = vsub.s32 0, %v3986_v6  ;;  %v936_v8 = vsub.s32 2, %v3986_v6  ;;  %v932_v10 = vsub.s32 1, %v3986_v6  ;;  %v4022_v36 = vand.u32 127, %v926_v5  ;;  %s4404_s20 = sld [smem:[#allocation10_spill]] }
 0x11f   : > { %s4400_s15 = scalar_lea.vmem %s4399_s2, %s3836_s22 }
 0x120   : > { %v2977_v0 = vld [vmem:[%s4400_s15] ss:$0 sm:$0xff]  ;;  %v929_v13 = vrot.slane %v924_v9, %v928_v7  ;;  %v937_v14 = vrot.slane %v924_v9, %v936_v8  ;;  %vm1155_vm4 = vcmp.lt.s32.totalorder %v4022_v36, 9 }
 0x121   : > { %1076 = vmatpush1.bf16.msra.mxu0 %v3399_v37  ;;  %3207 = vmatpush3.bf16.msra.mxu1 %v3400_v38 }
 0x122   : > { %1077 = vmatprep.subr.bf16.mxu0 %v3401_v39  ;;  %3208 = vmatprep.subr.bf16.mxu1 %v3663_v20 }
 0x124   : > { %p3090_p1 = scmp.le.s32.totalorder %s4404_s20, 0 }
 0x125   : > { %1078 = vmatpush1.bf16.msra.mxu0 %v3403_v40  ;;  %3209 = vmatpush3.bf16.msra.mxu1 %v3404_v41  ;;  %s4405_s29 = sld [smem:[#allocation27_spill]] (!%p3090_p1) }
 0x126   : > { %1079 = vmatprep.subr.bf16.mxu0 %v3405_v42  ;;  %3210 = vmatprep.subr.bf16.mxu1 %v3663_v20 }
 0x129   : > { %1080 = vmatpush1.bf16.msra.mxu0 %v3407_v44  ;;  %3211 = vmatpush3.bf16.msra.mxu1 %v3408_v45 }
 0x12a   : > { %1081 = vmatprep.subr.bf16.mxu0 %v3409_v46  ;;  %3212 = vmatprep.subr.bf16.mxu1 %v3663_v20 }
 0x12d   : > { %1082 = vmatpush1.bf16.msra.mxu0 %v3411_v47  ;;  %3213 = vmatpush3.bf16.msra.mxu1 %v3412_v48 }
 0x12e   : > { %1083 = vmatprep.subr.bf16.mxu0 %v3413_v49  ;;  %3214 = vmatprep.subr.bf16.mxu1 %v3663_v20 }
 0x131   : > { %1084 = vmatpush1.bf16.msra.mxu0 %v3415_v50  ;;  %3215 = vmatpush3.bf16.msra.mxu1 %v3416_v51 }
 0x132   : > { %3226 = vmatprep.subr.bf16.mxu1 %v3663_v20  ;;  %3220 = vmatprep.subr.bf16.mxu0 %v3663_v20 }
 0x19f   : > { %v853_v22 = vpop.xlane.xlu0 %852 }
 0x1a0   : > { %v857_v23 = vmul.f32 0.0078125, %v853_v22 }
 0x1a2   : > { %v3930_v24 = vsub.f32 %v848_v16, %v857_v23 }
 0x1a3   : > { %v855_v25 = vpop.xlane.xlu0 %854 }
 0x1a4   : > { %v858_v26 = vmul.f32 0.0078125, %v855_v25  ;;  %v861_v27 = vmul.f32 %v3930_v24, %v3930_v24 }
 0x1a6   : > { %v3934_v28 = vsub.f32 %v849_v17, %v858_v26  ;;  %863 = vadd.xlane.f32.xlu1 %v861_v27  ;;  %v933_v17 = vrot.slane %v924_v9, %v932_v10 }
 0x1a8   : > { %v862_v29 = vmul.f32 %v3934_v28, %v3934_v28 }
 0x1aa   : > { %865 = vadd.xlane.f32.xlu1 %v862_v29 }
 0x22f   : > { %v864_v52 = vpop.xlane.xlu1 %863 }
 0x230   : > { %v867_v53 = vmul.f32 0.0078125, %v864_v52 }
 0x232   : > { %v869_v54 = vadd.f32 1e-06, %v867_v53 }
 0x233   : > { %v866_v55 = vpop.xlane.xlu1 %865 }
 0x234   : > { %3505 = vrsqrt.f32 %v869_v54  ;;  %v868_v56 = vmul.f32 0.0078125, %v866_v55 }
 0x236   : > { %v870_v57 = vadd.f32 1e-06, %v868_v56 }
 0x238   : > { %3507 = vrsqrt.f32 %v870_v57 }
 0x241   : > { %v3506_v58 = vpop.eup %3505 }
 0x242   : > { %v873_v59 = vmul.f32 %v3506_v58, %v3930_v24 }
 0x244   : > { %v881_v63 = vmul.f32 %v2976_v60, %v873_v59 }
 0x245   : > { %v3508_v61 = vpop.eup %3507 }
 0x246   : > { %v874_v62 = vmul.f32 %v3508_v61, %v3934_v28  ;;  %v889_v2 = vadd.f32 %v2977_v0, %v881_v63 }
 0x248   : > { %v882_v1 = vmul.f32 %v2976_v60, %v874_v62 }
 0x24a   : > { %v890_v3 = vadd.f32 %v2977_v0, %v882_v1 }
 0x24c   : > { %v891_v4 = vpack.c.bf16 %v890_v3, %v889_v2 }
 0x24e   : > { %1102 = vmatmul.mubr.bf16.vlgmr.msra.gmra.mxu0 %v891_v4  ;;  %3217 = vmatmul.mubr.bf16.vlgmr.msra.gmra.mxu1 %v891_v4 }
 0x24f   : > { %3222 = vmatprep.mubr.msk.bf16.mxu0 %vm3665_vm2, %v3663_v20  ;;  %3228 = vmatprep.mubr.msk.bf16.mxu1 %vm3665_vm2, %v3663_v20 }
 0x30e   : > { %v1103_v11 = vpop.f32.mrf.mxu0  ;;  %v1146_v12 = vpop.f32.mrf.mxu1 }
 0x30f   : > { %v1104_v21 = vadd.f32 %v1103_v11, %v929_v13  ;;  %v1147_v22 = vadd.f32 %v1146_v12, %v937_v14 }
 0x310   : > { %v1105_v15 = vpop.f32.mrf.mxu0  ;;  %v3218_v16 = vpop.f32.mrf.mxu1 }
 0x311   : > { %v1106_v27 = vadd.f32 %v1105_v15, %v933_v17 }
 0x312   : > { %v1107_v18 = vpop.f32.mrf.mxu0  ;;  %v1149_v19 = vpop.f32.mrf.mxu1 }
 0x313   : > { %v1108_v23 = vadd.f32 %v1107_v18, %v929_v13  ;;  %v1150_v24 = vadd.f32 %v1149_v19, %v937_v14 }
 0x314   : > { %v1109_v25 = vpop.f32.mrf.mxu0  ;;  %v3219_v26 = vpop.f32.mrf.mxu1 }
 0x315   : > { %v3998_v28 = vpack.c.bf16 %v1108_v23, %v1104_v21  ;;  %v4000_v29 = vpack.c.bf16 %v1150_v24, %v1147_v22  ;;  %v1110_v30 = vadd.f32 %v1109_v25, %v933_v17  ;;  %v3419_v26 = vld [vmem:[%s3862_s23 + $0x18] sm:$0xff]  }
 0x317   : > { %v4002_v31 = vpack.c.bf16 %v1110_v30, %v1106_v27  ;;  %3227 = vmatpush3.bf16.msra.mxu1 %v4000_v29  ;;  %1297 = vrot.lane.b32.xlu1 %v3998_v28, %s3666_s18 }
 0x318   : > { %3238 = vmatprep.subr.bf16.mxu1 %v3663_v20 }
 0x319   : > { %1300 = vrot.lane.b32.xlu0 %v4002_v31, %s3666_s18  ;;  %v1180_v32 = vsel %vm1175_vm3, %v4002_v31, 0 }
 0x31a   : > { %3221 = vmatpush3.bf16.xpose.msra.mxu0 %v1180_v32 }
 0x31b   : > { %3232 = vmatprep.subr.bf16.mxu0 %v3663_v20 }
 0x321   : > { %3223 = vmatmul.mubr.msk.bf16.vlgmr.msra.gmra.mxu0 %vm1175_vm3, %v3998_v28 }
 0x322   : > { %3234 = vmatprep.mubr.msk.bf16.mxu0 %vm3665_vm2, %v3663_v20 }
 0x389   : > { %v1298_v35 = vpop.permute.xlu1 %1297 }
 0x38b   : > { %v1301_v33 = vpop.permute.xlu0 %1300 }
 0x38c   : > { %v1306_v34 = vsel %vm1175_vm3, %v1301_v33, 0 }
 0x38d   : > { %3233 = vmatpush3.bf16.xpose.msra.mxu0 %v1306_v34 }
 0x38e   : > { %3244 = vmatprep.subr.bf16.mxu0 %v3663_v20 }
 0x394   : > { %3235 = vmatmul.mubr.msk.bf16.vlgmr.msra.gmra.mxu0 %vm1175_vm3, %v1298_v35 }
 0x395   : > { %3248 = vmatprep.mubr.msk.bf16.mxu0 %vm3665_vm2, %v3663_v20  ;;  %3245 = vmatpush3.bf16.msra.mxu0 %v3419_v26 }
 0x396   : > { %3246 = vmatprep.subr.bf16.mxu0 %v3663_v20 }
 0x3e1   : > { %v1216_v37 = vpop.f32.mrf.mxu0 }
 0x3e2   : > { %v1223_v38 = vmul.f32 0.17677669, %v1216_v37 }
 0x3e3   : > { %v3224_v39 = vpop.f32.mrf.mxu0 }
 0x3e4   : > { %v1225_v40 = vsel %vm1155_vm4, %v1223_v38, -1e+30  ;;  %v3417_v38 = vld [vmem:[%s3862_s23 + $0x8] sm:$0xff]  }
 0x3e5   : > { %v1219_v41 = vpop.f32.mrf.mxu0  ;;  %v1228_v42 = vsel %vm1227_vm5, %v1225_v40, -inf }
 0x3e6   : > { %v1224_v44 = vmul.f32 0.17677669, %v1219_v41  ;;  %1229 = vmax.xlane.f32.xlu1 %v1228_v42  ;;  %v3420_v41 = vld [vmem:[%s3862_s23 + $0x10] sm:$0xff]  }
 0x3e7   : > { %v3225_v45 = vpop.f32.mrf.mxu0  ;;  %3247 = vmatpush3.bf16.msra.mxu0 %v3420_v41 }
 0x3e8   : > { %v1226_v46 = vsel %vm1155_vm4, %v1224_v44, -1e+30  ;;  %3260 = vmatprep.subr.bf16.mxu0 %v3663_v20 }
 0x3e9   : > { %v1231_v47 = vsel %vm1227_vm5, %v1226_v46, -inf }
 0x3ea   : > { %1232 = vmax.xlane.f32.xlu0 %v1231_v47 }
 0x454   : > { %v1342_v48 = vpop.f32.mrf.mxu0 }
 0x455   : > { %v1349_v49 = vmul.f32 0.17677669, %v1342_v48 }
 0x456   : > { %v3236_v50 = vpop.f32.mrf.mxu0 }
 0x457   : > { %v1351_v51 = vsel %vm1155_vm4, %v1349_v49, -1e+30 }
 0x458   : > { %v1345_v52 = vpop.f32.mrf.mxu0  ;;  %v1353_v53 = vsel %vm1227_vm5, %v1351_v51, -inf }
 0x459   : > { %v1350_v54 = vmul.f32 0.17677669, %v1345_v52  ;;  %1354 = vmax.xlane.f32.xlu0 %v1353_v53 }
 0x45a   : > { %v3237_v55 = vpop.f32.mrf.mxu0 }
 0x45b   : > { %v1352_v56 = vsel %vm1155_vm4, %v1350_v54, -1e+30 }
 0x45c   : > { %v1356_v57 = vsel %vm1227_vm5, %v1352_v56, -inf }
 0x45d   : > { %1357 = vmax.xlane.f32.xlu1 %v1356_v57 }
 0x46f   : > { %v1230_v58 = vpop.xlane.xlu1 %1229 }
 0x470   : > { %v1234_v59 = vsub.f32 %v1225_v40, %v1230_v58  ;;  %v3418_v40 = vld [vmem:[%s3862_s23] sm:$0xff]  }
 0x472   : > { %v1236_v60 = vmul.f32 1.442695, %v1234_v59 }
 0x473   : > { %v1233_v61 = vpop.xlane.xlu0 %1232 }
 0x474   : > { %3509 = vpow2.f32 %v1236_v60  ;;  %v1235_v62 = vsub.f32 %v1226_v46, %v1233_v61 }
 0x476   : > { %v1238_v63 = vmul.f32 1.442695, %v1235_v62 }
 0x478   : > { %3511 = vpow2.f32 %v1238_v63 }
 0x481   : > { %v3510_v0 = vpop.eup %3509 }
 0x482   : > { %v1240_v1 = vsel %vm1227_vm5, %v3510_v0, 0.0 }
 0x483   : > { %1241 = vadd.xlane.f32.xlu0 %v1240_v1 }
 0x485   : > { %v3512_v2 = vpop.eup %3511 }
 0x486   : > { %v1243_v3 = vsel %vm1227_vm5, %v3512_v2, 0.0 }
 0x487   : > { %1244 = vadd.xlane.f32.xlu1 %v1243_v3 }
 0x4e2   : > { %v1355_v4 = vpop.xlane.xlu0 %1354 }
 0x4e3   : > { %v1359_v5 = vsub.f32 %v1351_v51, %v1355_v4 }
 0x4e5   : > { %v1361_v9 = vmul.f32 1.442695, %v1359_v5 }
 0x4e6   : > { %v1358_v11 = vpop.xlane.xlu1 %1357 }
 0x4e7   : > { %3513 = vpow2.f32 %v1361_v9  ;;  %v1360_v12 = vsub.f32 %v1352_v56, %v1358_v11 }
 0x4e9   : > { %v1363_v13 = vmul.f32 1.442695, %v1360_v12 }
 0x4eb   : > { %3515 = vpow2.f32 %v1363_v13 }
 0x4f4   : > { %v3514_v14 = vpop.eup %3513 }
 0x4f5   : > { %v1365_v15 = vsel %vm1227_vm5, %v3514_v14, 0.0 }
 0x4f6   : > { %1366 = vadd.xlane.f32.xlu0 %v1365_v15 }
 0x4f8   : > { %v3516_v16 = vpop.eup %3515 }
 0x4f9   : > { %v1368_v17 = vsel %vm1227_vm5, %v3516_v16, 0.0 }
 0x4fa   : > { %1369 = vadd.xlane.f32.xlu1 %v1368_v17 }
 0x50b   : > { %1539 = vrot.lane.b32.xlu1 %v4002_v31, %s3667_s16 }
 0x50c   : > { %1377 = vrot.lane.b32.xlu0 %v4000_v29, %s3666_s18  ;;  %v1242_v18 = vpop.xlane.xlu0 %1241  ;;  %s4406_s18 = sld [smem:[#allocation28_spill]] (!%p3090_p1) }
 0x50d   : > { %3517 = vrcp.f32 %v1242_v18 }
 0x50f   : > { %1537 = vrot.lane.b32.xlu1 %v3998_v28, %s3667_s16 }
 0x510   : > { %v1245_v19 = vpop.xlane.xlu1 %1244 }
 0x511   : > { %3519 = vrcp.f32 %v1245_v19 }
 0x51a   : > { %v3518_v21 = vpop.eup %3517 }
 0x51b   : > { %v1248_v23 = vmul.f32 %v3518_v21, %v3510_v0 }
 0x51e   : > { %v3520_v22 = vpop.eup %3519 }
 0x51f   : > { %v1249_v24 = vmul.f32 %v3520_v22, %v3512_v2 }
 0x521   : > { %v1250_v25 = vpack.c.bf16 %v1249_v24, %v1248_v23 }
 0x523   : > { %3229 = vmatmul.mubr.msk.bf16.vlgmr.msra.gmra.mxu1 %vm1227_vm5, %v1250_v25 }
 0x524   : > { %3240 = vmatprep.mubr.msk.bf16.mxu1 %vm3665_vm2, %v3663_v20 }
 0x57f   : > { %v1367_v27 = vpop.xlane.xlu0 %1366 }
 0x580   : > { %3521 = vrcp.f32 %v1367_v27 }
 0x583   : > { %v1378_v30 = vpop.permute.xlu0 %1377  ;;  %v1370_v32 = vpop.xlane.xlu1 %1369 }
 0x584   : > { %3523 = vrcp.f32 %v1370_v32  ;;  %3239 = vmatpush3.bf16.msra.mxu1 %v1378_v30 }
 0x585   : > { %3252 = vmatprep.subr.bf16.mxu1 %v3663_v20 }
 0x587   : > { %v1540_v50 = vpop.permute.xlu1 %1539 }
 0x588   : > { %v1545_v54 = vsel %vm1175_vm3, %v1540_v50, 0 }
 0x58b   : > { %v1538_v55 = vpop.permute.xlu1 %1537 }
 0x58d   : > { %v3522_v33 = vpop.eup %3521 }
 0x58e   : > { %v1373_v35 = vmul.f32 %v3522_v33, %v3514_v14 }
 0x591   : > { %v3524_v34 = vpop.eup %3523 }
 0x592   : > { %v1374_v37 = vmul.f32 %v3524_v34, %v3516_v16 }
 0x594   : > { %v1375_v39 = vpack.c.bf16 %v1374_v37, %v1373_v35 }
 0x596   : > { %3241 = vmatmul.mubr.msk.bf16.vlgmr.msra.gmra.mxu1 %vm1227_vm5, %v1375_v39  ;;  %v3422_v39 = vld [vmem:[%s3862_s23 + $0x20] sm:$0xff]  }
 0x597   : > { %3253 = vmatpush3.bf16.msra.mxu1 %v3417_v38  ;;  %3256 = vmatprep.mubr.msk.bf16.mxu1 %vm3665_vm2, %v3663_v20  ;;  %v3421_v38 = vld [vmem:[%s3862_s23 + $0x28] sm:$0xff]  }
 0x598   : > { %3254 = vmatprep.subr.bf16.mxu1 %v3663_v20 }
 0x59b   : > { %3255 = vmatpush3.bf16.msra.mxu1 %v3418_v40 }
 0x59c   : > { %3266 = vmatprep.subr.bf16.mxu1 %v3663_v20 }
 0x5e3   : > { %v1288_v42 = vpop.f32.mrf.mxu1 }
 0x5e5   : > { %v3230_v44 = vpop.f32.mrf.mxu1 }
 0x5e7   : > { %v1291_v45 = vpop.f32.mrf.mxu1 }
 0x5e8   : > { %v1295_v46 = vpack.c.bf16 %v1291_v45, %v1288_v42 }
 0x5e9   : > { %v3231_v47 = vpop.f32.mrf.mxu1 }
 0x5ea   : > { %3257 = vmatmul.mubr.msk.bf16.vlgmr.msra.gmra.mxu1 %vm1175_vm3, %v1295_v46 }
 0x5eb   : > { %3268 = vmatprep.mubr.msk.bf16.mxu1 %vm3665_vm2, %v3663_v20 }
 0x656   : > { %v1417_v48 = vpop.f32.mrf.mxu1 }
 0x658   : > { %v3242_v49 = vpop.f32.mrf.mxu1 }
 0x65a   : > { %v1420_v51 = vpop.f32.mrf.mxu1 }
 0x65b   : > { %v1424_v52 = vpack.c.bf16 %v1420_v51, %v1417_v48 }
 0x65c   : > { %v3243_v53 = vpop.f32.mrf.mxu1 }
 0x65d   : > { %3249 = vmatmul.mubr.msk.bf16.vlgmr.msra.gmra.mxu0 %vm1175_vm3, %v1424_v52 }
 0x65e   : > { %3261 = vmatpush3.bf16.xpose.msra.mxu0 %v1545_v54  ;;  %3262 = vmatprep.mubr.msk.bf16.mxu0 %vm3665_vm2, %v3663_v20 }
 0x65f   : > { %3272 = vmatprep.subr.bf16.mxu0 %v3663_v20 }
 0x665   : > { %3263 = vmatmul.mubr.msk.bf16.vlgmr.msra.gmra.mxu0 %vm1175_vm3, %v1538_v55 }
 0x666   : > { %3276 = vmatprep.mubr.msk.bf16.mxu0 %vm3665_vm2, %v3663_v20  ;;  %3273 = vmatpush3.bf16.msra.mxu0 %v3421_v38 }
 0x667   : > { %3274 = vmatprep.subr.bf16.mxu0 %v3663_v20 }
 0x66a   : > { %3275 = vmatpush3.bf16.msra.mxu0 %v3422_v39 }
 0x66b   : > { %3286 = vmatprep.subr.bf16.mxu0 %v3663_v20 }
 0x6aa   : > { %v4073_v56 = vpop.f32.mrf.mxu1 }
 0x6ac   : > { %v3258_v57 = vpop.f32.mrf.mxu1 }
 0x6ae   : > { %v4075_v58 = vpop.f32.mrf.mxu1 }
 0x6b0   : > { %v3259_v59 = vpop.f32.mrf.mxu1 }
 0x71d   : > { %v4077_v60 = vpop.f32.mrf.mxu0 }
 0x71e   : > { %v1531_v36 = vadd.f32 %v4073_v56, %v4077_v60 }
 0x71f   : > { %v3250_v61 = vpop.f32.mrf.mxu0 }
 0x721   : > { %v4079_v62 = vpop.f32.mrf.mxu0 }
 0x723   : > { %v3251_v63 = vpop.f32.mrf.mxu0 }
 0x725   : > { %v1581_v0 = vpop.f32.mrf.mxu0 }
 0x726   : > { %v1588_v1 = vmul.f32 0.17677669, %v1581_v0 }
 0x727   : > { %v3264_v2 = vpop.f32.mrf.mxu0 }
 0x728   : > { %v1590_v3 = vsel %vm1155_vm4, %v1588_v1, -1e+30 }
 0x729   : > { %v1584_v4 = vpop.f32.mrf.mxu0  ;;  %v1592_v5 = vsel %vm1227_vm5, %v1590_v3, -inf }
 0x72a   : > { %v1589_v9 = vmul.f32 0.17677669, %v1584_v4  ;;  %1593 = vmax.xlane.f32.xlu1 %v1592_v5 }
 0x72b   : > { %v3265_v11 = vpop.f32.mrf.mxu0 }
 0x72c   : > { %v1591_v12 = vsel %vm1155_vm4, %v1589_v9, -1e+30 }
 0x72d   : > { %v1595_v13 = vsel %vm1227_vm5, %v1591_v12, -inf }
 0x72e   : > { %1596 = vmax.xlane.f32.xlu0 %v1595_v13  ;;  %v1534_v13 = vadd.f32 %v4075_v58, %v4079_v62  ;;  %v3423_v58 = vld [vmem:[%s3862_s23 + $0x38] sm:$0xff]   ;;  %v3424_v62 = vld [vmem:[%s3862_s23 + $0x30] sm:$0xff]   ;;  %s4401_s23 = scalar_lea.vmem %s4337_s8, %s3836_s22 }
 0x73b   : > { %1615 = vrot.lane.b32.xlu1 %v4000_v29, %s3667_s16 }
 0x73f   : > { %1721 = vrot.lane.b32.xlu1 %v3998_v28, %s3668_s19 }
 0x7b3   : > { %v1594_v14 = vpop.xlane.xlu1 %1593 }
 0x7b4   : > { %v1598_v15 = vsub.f32 %v1590_v3, %v1594_v14 }
 0x7b6   : > { %v1600_v16 = vmul.f32 1.442695, %v1598_v15 }
 0x7b7   : > { %v1616_v17 = vpop.permute.xlu1 %1615  ;;  %v1597_v18 = vpop.xlane.xlu0 %1596 }
 0x7b8   : > { %3525 = vpow2.f32 %v1600_v16  ;;  %v1599_v19 = vsub.f32 %v1591_v12, %v1597_v18  ;;  %3267 = vmatpush3.bf16.msra.mxu1 %v1616_v17 }
 0x7b9   : > { %3280 = vmatprep.subr.bf16.mxu1 %v3663_v20 }
 0x7ba   : > { %v1602_v21 = vmul.f32 1.442695, %v1599_v19 }
 0x7bc   : > { %3527 = vpow2.f32 %v1602_v21 }
 0x7c5   : > { %v3526_v22 = vpop.eup %3525 }
 0x7c6   : > { %v1604_v23 = vsel %vm1227_vm5, %v3526_v22, 0.0 }
 0x7c7   : > { %1605 = vadd.xlane.f32.xlu0 %v1604_v23 }
 0x7c9   : > { %v3528_v24 = vpop.eup %3527 }
 0x7ca   : > { %v1607_v25 = vsel %vm1227_vm5, %v3528_v24, 0.0 }
 0x7cb   : > { %1608 = vadd.xlane.f32.xlu0 %v1607_v25 }
 0x7e1   : > { %1723 = vrot.lane.b32.xlu0 %v4002_v31, %s3668_s19  ;;  %v1722_v31 = vpop.permute.xlu1 %1721 }
 0x850   : > { %v1606_v28 = vpop.xlane.xlu0 %1605 }
 0x851   : > { %3529 = vrcp.f32 %v1606_v28 }
 0x854   : > { %v1609_v26 = vpop.xlane.xlu0 %1608 }
 0x855   : > { %3531 = vrcp.f32 %v1609_v26 }
 0x858   : > { %v1724_v34 = vpop.permute.xlu0 %1723 }
 0x859   : > { %v1729_v37 = vsel %vm1175_vm3, %v1724_v34, 0 }
 0x85e   : > { %v3530_v27 = vpop.eup %3529 }
 0x85f   : > { %v1612_v32 = vmul.f32 %v3530_v27, %v3526_v22 }
 0x862   : > { %v3532_v30 = vpop.eup %3531 }
 0x863   : > { %v1613_v33 = vmul.f32 %v3532_v30, %v3528_v24 }
 0x865   : > { %v1614_v35 = vpack.c.bf16 %v1613_v33, %v1612_v32  ;;  %v3561_v33 = vld [vmem:[#allocation2] sm:$0xff] }
 0x867   : > { %3269 = vmatmul.mubr.msk.bf16.vlgmr.msra.gmra.mxu1 %vm1227_vm5, %v1614_v35 }
 0x868   : > { %3281 = vmatpush3.bf16.xpose.msra.mxu1 %v1729_v37  ;;  %3282 = vmatprep.mubr.msk.bf16.mxu1 %vm3665_vm2, %v3663_v20 }
 0x869   : > { %3292 = vmatprep.subr.bf16.mxu1 %v3663_v20 }
 0x86f   : > { %3283 = vmatmul.mubr.msk.bf16.vlgmr.msra.gmra.mxu1 %vm1175_vm3, %v1722_v31 }
 0x870   : > { %3296 = vmatprep.mubr.msk.bf16.mxu1 %vm3665_vm2, %v3663_v20  ;;  %3293 = vmatpush3.bf16.msra.mxu1 %v3423_v58 }
 0x871   : > { %3294 = vmatprep.subr.bf16.mxu1 %v3663_v20 }
 0x874   : > { %3295 = vmatpush3.bf16.msra.mxu1 %v3424_v62 }
 0x927   : > { %v1655_v40 = vpop.f32.mrf.mxu1 }
 0x929   : > { %v3270_v41 = vpop.f32.mrf.mxu1 }
 0x92a   : > { %v3425_v41 = vld [vmem:[%s3886_s26 + $0xe0] ss:$16 sps:$4 sm:$0xff]  }
 0x92b   : > { %v1658_v42 = vpop.f32.mrf.mxu1 }
 0x92c   : > { %v1662_v44 = vpack.c.bf16 %v1658_v42, %v1655_v40  ;;  %v3427_v42 = vld [vmem:[%s3886_s26 + $0xe4] ss:$16 sps:$4 sm:$0xff]  }
 0x92d   : > { %v3271_v45 = vpop.f32.mrf.mxu1 }
 0x92e   : > { %3277 = vmatmul.mubr.msk.bf16.vlgmr.msra.gmra.mxu0 %vm1175_vm3, %v1662_v44  ;;  %v3428_v44 = vld [vmem:[%s3886_s26 + $0xe8] ss:$16 sps:$4 sm:$0xff]   ;;  %v3430_v45 = vld [vmem:[%s3886_s26 + $0xec] ss:$16 sps:$4 sm:$0xff]  }
 0x92f   : > { %v1765_v46 = vpop.f32.mrf.mxu1  ;;  %3288 = vmatprep.mubr.msk.bf16.mxu0 %vm3665_vm2, %v3663_v20  ;;  %v3022_v20 = vld [vmem:[%s4401_s23] ss:$0 sm:$0xff]  ;;  %2214 = vmatprep.subr.bf16.mxu1 %v3430_v45  ;;  %v3477_v45 = vld [vmem:[%s3896_s4 + $0x70] sm:$0xff]  }
 0x930   : > { %v1772_v47 = vmul.f32 0.17677669, %v1765_v46 }
 0x931   : > { %v3284_v48 = vpop.f32.mrf.mxu1 }
 0x932   : > { %v1774_v49 = vsel %vm1155_vm4, %v1772_v47, -1e+30 }
 0x933   : > { %v1768_v50 = vpop.f32.mrf.mxu1  ;;  %v1776_v51 = vsel %vm1227_vm5, %v1774_v49, -inf }
 0x934   : > { %v1773_v52 = vmul.f32 0.17677669, %v1768_v50  ;;  %1777 = vmax.xlane.f32.xlu1 %v1776_v51 }
 0x935   : > { %v3285_v53 = vpop.f32.mrf.mxu1 }
 0x936   : > { %v1775_v54 = vsel %vm1155_vm4, %v1773_v52, -1e+30 }
 0x937   : > { %v1779_v55 = vsel %vm1227_vm5, %v1775_v54, -inf }
 0x938   : > { %1780 = vmax.xlane.f32.xlu0 %v1779_v55  ;;  %v3436_v55 = vld [vmem:[%s3886_s26 + $0xcc] ss:$16 sps:$4 sm:$0xff]  }
 0x9bd   : > { %v1778_v57 = vpop.xlane.xlu1 %1777 }
 0x9be   : > { %v1782_v59 = vsub.f32 %v1774_v49, %v1778_v57  ;;  %v3431_v57 = vld [vmem:[%s3886_s26 + $0xc0] ss:$16 sps:$4 sm:$0xff]  }
 0x9c0   : > { %v1784_v61 = vmul.f32 1.442695, %v1782_v59  ;;  %v3434_v59 = vld [vmem:[%s3886_s26 + $0xc8] ss:$16 sps:$4 sm:$0xff]  }
 0x9c1   : > { %v1781_v63 = vpop.xlane.xlu0 %1780 }
 0x9c2   : > { %3533 = vpow2.f32 %v1784_v61  ;;  %v1783_v0 = vsub.f32 %v1775_v54, %v1781_v63  ;;  %v3433_v54 = vld [vmem:[%s3886_s26 + $0xc4] ss:$16 sps:$4 sm:$0xff]   ;;  %v3442_v63 = vld [vmem:[%s3886_s26 + $0xac] ss:$16 sps:$4 sm:$0xff]  }
 0x9c3   : > { %v3439_v61 = vld [vmem:[%s3886_s26 + $0xa4] ss:$16 sps:$4 sm:$0xff]  }
 0x9c4   : > { %v1786_v1 = vmul.f32 1.442695, %v1783_v0  ;;  %v3437_v0 = vld [vmem:[%s3886_s26 + $0xa0] ss:$16 sps:$4 sm:$0xff]  }
 0x9c6   : > { %3535 = vpow2.f32 %v1786_v1  ;;  %v3440_v1 = vld [vmem:[%s3886_s26 + $0xa8] ss:$16 sps:$4 sm:$0xff]  }
 0x9cf   : > { %v3534_v2 = vpop.eup %3533 }
 0x9d0   : > { %v1788_v3 = vsel %vm1227_vm5, %v3534_v2, 0.0 }
 0x9d1   : > { %1789 = vadd.xlane.f32.xlu0 %v1788_v3  ;;  %v3445_v3 = vld [vmem:[%s3886_s26 + $0x84] ss:$16 sps:$4 sm:$0xff]  }
 0x9d3   : > { %v3536_v4 = vpop.eup %3535 }
 0x9d4   : > { %v1791_v5 = vsel %vm1227_vm5, %v3536_v4, 0.0 }
 0x9d5   : > { %1792 = vadd.xlane.f32.xlu1 %v1791_v5  ;;  %v3448_v5 = vld [vmem:[%s3886_s26 + $0x8c] ss:$16 sps:$4 sm:$0xff]  }
 0x9e7   : > { %1799 = vrot.lane.b32.xlu0 %v4000_v29, %s3668_s19 }
 0x9ee   : > { %v1712_v9 = vpop.f32.mrf.mxu0 }
 0x9ef   : > { %v1719_v11 = vadd.f32 %v1712_v9, %v1531_v36  ;;  %v3451_v36 = vld [vmem:[%s3886_s26 + $0x64] ss:$16 sps:$4 sm:$0xff]   ;;  %v3454_v9 = vld [vmem:[%s3886_s26 + $0x6c] ss:$16 sps:$4 sm:$0xff]  }
 0x9f0   : > { %v3278_v12 = vpop.f32.mrf.mxu0 }
 0x9f1   : > { %v3452_v12 = vld [vmem:[%s3886_s26 + $0x68] ss:$16 sps:$4 sm:$0xff]  }
 0x9f2   : > { %v1715_v14 = vpop.f32.mrf.mxu0 }
 0x9f3   : > { %v1720_v15 = vadd.f32 %v1715_v14, %v1534_v13  ;;  %v3457_v13 = vld [vmem:[%s3886_s26 + $0x44] ss:$16 sps:$4 sm:$0xff]   ;;  %v3460_v14 = vld [vmem:[%s3886_s26 + $0x4c] ss:$16 sps:$4 sm:$0xff]  }
 0x9f4   : > { %v3279_v16 = vpop.f32.mrf.mxu0 }
 0x9f5   : > { %v3458_v16 = vld [vmem:[%s3886_s26 + $0x48] ss:$16 sps:$4 sm:$0xff]  }
 0xa5a   : > { %v1790_v17 = vpop.xlane.xlu0 %1789 }
 0xa5b   : > { %3537 = vrcp.f32 %v1790_v17  ;;  %v3463_v17 = vld [vmem:[%s3886_s26 + $0x24] ss:$16 sps:$4 sm:$0xff]  }
 0xa5e   : > { %v1793_v18 = vpop.xlane.xlu1 %1792  ;;  %v1800_v19 = vpop.permute.xlu0 %1799 }
 0xa5f   : > { %3539 = vrcp.f32 %v1793_v18  ;;  %3287 = vmatpush3.bf16.msra.mxu0 %v1800_v19  ;;  %v3466_v18 = vld [vmem:[%s3886_s26 + $0x2c] ss:$16 sps:$4 sm:$0xff]   ;;  %v3461_v19 = vld [vmem:[%s3886_s26 + $0x20] ss:$16 sps:$4 sm:$0xff]  }
 0xa60   : > { %2171 = vmatprep.subr.bf16.mxu0 %v3427_v42  ;;  %v3475_v42 = vld [vmem:[%s3896_s4 + $0x38] sm:$0xff]  }
 0xa68   : > { %v3538_v29 = vpop.eup %3537 }
 0xa69   : > { %v1796_v56 = vmul.f32 %v3538_v29, %v3534_v2  ;;  %v3443_v2 = vld [vmem:[%s3886_s26 + $0x80] ss:$16 sps:$4 sm:$0xff]   ;;  %v3464_v29 = vld [vmem:[%s3886_s26 + $0x28] ss:$16 sps:$4 sm:$0xff]  }
 0xa6c   : > { %v3540_v21 = vpop.eup %3539 }
 0xa6d   : > { %v1797_v60 = vmul.f32 %v3540_v21, %v3536_v4  ;;  %v3446_v4 = vld [vmem:[%s3886_s26 + $0x88] ss:$16 sps:$4 sm:$0xff]   ;;  %v3469_v21 = vld [vmem:[%s3886_s26 + $0x4] ss:$16 sps:$4 sm:$0xff]  }
 0xa6f   : > { %v1798_v22 = vpack.c.bf16 %v1797_v60, %v1796_v56  ;;  %v3472_v56 = vld [vmem:[%s3886_s26 + $0xc] ss:$16 sps:$4 sm:$0xff]   ;;  %v3467_v60 = vld [vmem:[%s3886_s26] ss:$16 sps:$4 sm:$0xff]  }
 0xa71   : > { %3289 = vmatmul.mubr.msk.bf16.vlgmr.msra.gmra.mxu0 %vm1227_vm5, %v1798_v22  ;;  %v3470_v22 = vld [vmem:[%s3886_s26 + $0x8] ss:$16 sps:$4 sm:$0xff]  }
 0xa72   : > { %2203 = vmatprep.mubr.bf16.mxu0 %v3664_v43  ;;  %2172 = vmatpush1.bf16.msra.mxu0 %v3425_v41  ;;  %v3474_v41 = vld [vmem:[%s3896_s4 + $0xf8] sm:$0xff]  }
 0xa73   : > { %2173 = vmatprep.subr.bf16.mxu0 %v3433_v54  ;;  %v3486_v54 = vld [vmem:[%s3896_s4 + $0xe0] sm:$0xff]  }
 0xa76   : > { %2174 = vmatpush1.bf16.msra.mxu0 %v3431_v57  ;;  %v3488_v57 = vld [vmem:[%s3896_s4 + $0xa0] sm:$0xff]  }
 0xa77   : > { %2175 = vmatprep.subr.bf16.mxu0 %v3439_v61  ;;  %v3490_v61 = vld [vmem:[%s3896_s4 + $0xd8] sm:$0xff]  }
 0xa7a   : > { %2176 = vmatpush1.bf16.msra.mxu0 %v3437_v0  ;;  %v3492_v0 = vld [vmem:[%s3896_s4 + $0x98] sm:$0xff]  }
 0xa7b   : > { %2177 = vmatprep.subr.bf16.mxu0 %v3445_v3  ;;  %v3495_v3 = vld [vmem:[%s3896_s4 + $0x10] sm:$0xff]  }
 0xa7e   : > { %2178 = vmatpush1.bf16.msra.mxu0 %v3443_v2  ;;  %v3494_v2 = vld [vmem:[%s3896_s4 + $0xd0] sm:$0xff]  }
 0xa7f   : > { %2179 = vmatprep.subr.bf16.mxu0 %v3451_v36  ;;  %v3498_v36 = vld [vmem:[%s3896_s4 + $0xc8] sm:$0xff]  }
 0xb31   : > { %v1839_v23 = vpop.f32.mrf.mxu0 }
 0xb33   : > { %v3290_v24 = vpop.f32.mrf.mxu0 }
 0xb35   : > { %v1842_v25 = vpop.f32.mrf.mxu0 }
 0xb36   : > { %v1846_v28 = vpack.c.bf16 %v1842_v25, %v1839_v23 }
 0xb37   : > { %v3291_v26 = vpop.f32.mrf.mxu0 }
 0xb38   : > { %3297 = vmatmul.mubr.msk.bf16.vlgmr.msra.gmra.mxu1 %vm1175_vm3, %v1846_v28 }
 0xb39   : > { %2246 = vmatprep.mubr.bf16.mxu1 %v3664_v43  ;;  %v3562_v43 = vld [vmem:[#allocation2 + $0x8] sm:$0xff]  ;;  %2215 = vmatpush1.bf16.msra.mxu1 %v3428_v44  ;;  %v3476_v44 = vld [vmem:[%s3896_s4 + $0xb8] sm:$0xff]  }
 0xb3a   : > { %2216 = vmatprep.subr.bf16.mxu1 %v3436_v55  ;;  %v3487_v55 = vld [vmem:[%s3896_s4 + $0x20] sm:$0xff]  }
 0xb3d   : > { %2217 = vmatpush1.bf16.msra.mxu1 %v3434_v59  ;;  %v3489_v59 = vld [vmem:[%s3896_s4 + $0x58] sm:$0xff]  }
 0xb3e   : > { %2218 = vmatprep.subr.bf16.mxu1 %v3442_v63  ;;  %v3491_v63 = vld [vmem:[%s3896_s4 + $0x18] sm:$0xff]  }
 0xb41   : > { %2219 = vmatpush1.bf16.msra.mxu1 %v3440_v1  ;;  %v3493_v1 = vld [vmem:[%s3896_s4 + $0x50] sm:$0xff]  }
 0xb42   : > { %2220 = vmatprep.subr.bf16.mxu1 %v3448_v5  ;;  %v3497_v5 = vld [vmem:[%s3896_s4 + $0x48] sm:$0xff]  }
 0xb45   : > { %2221 = vmatpush1.bf16.msra.mxu1 %v3446_v4  ;;  %v3496_v4 = vld [vmem:[%s3896_s4 + $0x90] sm:$0xff]  }
 0xb46   : > { %2222 = vmatprep.subr.bf16.mxu1 %v3454_v9  ;;  %v3499_v9 = vld [vmem:[%s3896_s4 + $0x8] sm:$0xff]  }
 0xb49   : > { %2223 = vmatpush1.bf16.msra.mxu1 %v3452_v12  ;;  %v3501_v12 = vld [vmem:[%s3896_s4 + $0x40] sm:$0xff]  }
 0xb4a   : > { %2224 = vmatprep.subr.bf16.mxu1 %v3460_v14  ;;  %v3503_v14 = vld [vmem:[%s3896_s4] sm:$0xff]  }
 0xb4d   : > { %2225 = vmatpush1.bf16.msra.mxu1 %v3458_v16  ;;  %v1989_v16 = vld [vmem:[%s3891_s17] sm:$0xf] }
 0xb4e   : > { %2226 = vmatprep.subr.bf16.mxu1 %v3466_v18  ;;  %v1994_v18 = vrot.slane %v1989_v16, %v928_v7 }
 0xb51   : > { %2227 = vmatpush1.bf16.msra.mxu1 %v3464_v29  ;;  %v1998_v29 = vrot.slane %v1989_v16, %v932_v10 }
 0xb52   : > { %2228 = vmatprep.subr.bf16.mxu1 %v3472_v56 }
 0xb55   : > { %2229 = vmatpush1.bf16.msra.mxu1 %v3470_v22 }
 0xb56   : > { %3166 = vmatprep.subr.bf16.mxu1 %v3474_v41 }
 0xbf8   : > { %v1896_v27 = vpop.f32.mrf.mxu1 }
 0xbf9   : > { %v1903_v30 = vadd.f32 %v1896_v27, %v1719_v11  ;;  %v3449_v11 = vld [vmem:[%s3886_s26 + $0x60] ss:$16 sps:$4 sm:$0xff]  }
 0xbfa   : > { %v3298_v32 = vpop.f32.mrf.mxu1  ;;  %2180 = vmatpush1.bf16.msra.mxu0 %v3449_v11  ;;  %v3500_v11 = vld [vmem:[%s3896_s4 + $0x88] sm:$0xff]  }
 0xbfb   : > { %v1905_v34 = vadd.f32 %v3561_v33, %v1903_v30  ;;  %2181 = vmatprep.subr.bf16.mxu0 %v3457_v13  ;;  %v3023_v30 = vld [vmem:[%s4402_s0] ss:$0 sm:$0xff] }
 0xbfc   : > { %v1899_v35 = vpop.f32.mrf.mxu1  ;;  %v3502_v13 = vld [vmem:[%s3896_s4 + $0xc0] sm:$0xff]  }
 0xbfd   : > { %v1904_v37 = vadd.f32 %v1899_v35, %v1720_v15  ;;  %v4137_v31 = vadd.f32 %v3022_v20, %v1905_v34  ;;  %v3455_v15 = vld [vmem:[%s3886_s26 + $0x40] ss:$16 sps:$4 sm:$0xff]  }
 0xbfe   : > { %v3299_v38 = vpop.f32.mrf.mxu1  ;;  %2182 = vmatpush1.bf16.msra.mxu0 %v3455_v15  ;;  %v3024_v34 = vld [vmem:[%s4403_s25] ss:$0 sm:$0xff] }
 0xbff   : > { %v1906_v39 = vadd.f32 %v3562_v43, %v1904_v37  ;;  %1918 = vadd.xlane.f32.xlu1 %v4137_v31  ;;  %2183 = vmatprep.subr.bf16.mxu0 %v3463_v17  ;;  %v3504_v15 = vld [vmem:[%s3896_s4 + $0x80] sm:$0xff]   ;;  %v2005_v17 = vsub.s32 3, %v3986_v6 }
 0xc01   : > { %v4140_v40 = vadd.f32 %v3022_v20, %v1906_v39  ;;  %v3473_v39 = vld [vmem:[%s3896_s4 + $0x78] sm:$0xff]  }
 0xc02   : > { %2184 = vmatpush1.bf16.msra.mxu0 %v3461_v19  ;;  %v2002_v19 = vrot.slane %v1989_v16, %v936_v8 }
 0xc03   : > { %1920 = vadd.xlane.f32.xlu1 %v4140_v40  ;;  %2185 = vmatprep.subr.bf16.mxu0 %v3469_v21  ;;  %v2006_v21 = vrot.slane %v1989_v16, %v2005_v17 }
 0xc06   : > { %2186 = vmatpush1.bf16.msra.mxu0 %v3467_v60 }
 0xc07   : > { %3144 = vmatprep.subr.bf16.mxu0 %v3473_v39 }
 0xc88   : > { %v1919_v46 = vpop.xlane.xlu1 %1918 }
 0xc89   : > { %v1922_v47 = vmul.f32 0.0078125, %v1919_v46  ;;  %v3478_v46 = vld [vmem:[%s3896_s4 + $0xf0] sm:$0xff]  }
 0xc8b   : > { %v4148_v48 = vsub.f32 %v4137_v31, %v1922_v47  ;;  %v3479_v47 = vld [vmem:[%s3896_s4 + $0x30] sm:$0xff]  }
 0xc8c   : > { %v1921_v49 = vpop.xlane.xlu1 %1920 }
 0xc8d   : > { %v1923_v50 = vmul.f32 0.0078125, %v1921_v49  ;;  %v1926_v51 = vmul.f32 %v4148_v48, %v4148_v48  ;;  %v3481_v49 = vld [vmem:[%s3896_s4 + $0x68] sm:$0xff]  }
 0xc8f   : > { %v4153_v52 = vsub.f32 %v4140_v40, %v1923_v50  ;;  %1928 = vadd.xlane.f32.xlu1 %v1926_v51  ;;  %v3482_v50 = vld [vmem:[%s3896_s4 + $0xe8] sm:$0xff]  }
 0xc90   : > { %v3483_v51 = vld [vmem:[%s3896_s4 + $0x28] sm:$0xff]  }
 0xc91   : > { %v1927_v53 = vmul.f32 %v4153_v52, %v4153_v52 }
 0xc93   : > { %1930 = vadd.xlane.f32.xlu1 %v1927_v53  ;;  %v3485_v53 = vld [vmem:[%s3896_s4 + $0x60] sm:$0xff]  }
 0xd18   : > { %v1929_v58 = vpop.xlane.xlu1 %1928 }
 0xd19   : > { %v1932_v62 = vmul.f32 0.0078125, %v1929_v58 }
 0xd1b   : > { %v1934_v23 = vadd.f32 1e-06, %v1932_v62 }
 0xd1c   : > { %v1931_v24 = vpop.xlane.xlu1 %1930 }
 0xd1d   : > { %3541 = vrsqrt.f32 %v1934_v23  ;;  %v1933_v25 = vmul.f32 0.0078125, %v1931_v24 }
 0xd1f   : > { %v1935_v28 = vadd.f32 1e-06, %v1933_v25 }
 0xd21   : > { %3543 = vrsqrt.f32 %v1935_v28 }
 0xd2a   : > { %v3542_v26 = vpop.eup %3541 }
 0xd2b   : > { %v1938_v27 = vmul.f32 %v3542_v26, %v4148_v48  ;;  %v3480_v48 = vld [vmem:[%s3896_s4 + $0xb0] sm:$0xff]  }
 0xd2d   : > { %v1946_v33 = vmul.f32 %v3023_v30, %v1938_v27 }
 0xd2e   : > { %v3544_v32 = vpop.eup %3543 }
 0xd2f   : > { %v1939_v20 = vmul.f32 %v3544_v32, %v4153_v52  ;;  %v1954_v37 = vadd.f32 %v3024_v34, %v1946_v33  ;;  %v3484_v52 = vld [vmem:[%s3896_s4 + $0xa8] sm:$0xff]  }
 0xd31   : > { %v1947_v35 = vmul.f32 %v3023_v30, %v1939_v20 }
 0xd33   : > { %v1955_v38 = vadd.f32 %v3024_v34, %v1947_v35 }
 0xd35   : > { %v1956_v43 = vpack.c.bf16 %v1955_v38, %v1954_v37 }
 0xd37   : > { %2204 = vmatmul.mubr.bf16.vlgmr.msra.gmra.mxu0 %v1956_v43  ;;  %2247 = vmatmul.mubr.bf16.vlgmr.msra.gmra.mxu1 %v1956_v43 }
 0xd38   : > { %3145 = vmatpush3.bf16.msra.mxu0 %v3475_v42  ;;  %3167 = vmatpush3.bf16.msra.mxu1 %v3476_v44 }
 0xd39   : > { %3146 = vmatprep.subr.bf16.mxu0 %v3477_v45  ;;  %3168 = vmatprep.subr.bf16.mxu1 %v3478_v46 }
 0xd3c   : > { %3147 = vmatpush3.bf16.msra.mxu0 %v3479_v47  ;;  %3169 = vmatpush3.bf16.msra.mxu1 %v3480_v48 }
 0xd3d   : > { %3148 = vmatprep.subr.bf16.mxu0 %v3481_v49  ;;  %3170 = vmatprep.subr.bf16.mxu1 %v3482_v50 }
 0xd40   : > { %3149 = vmatpush3.bf16.msra.mxu0 %v3483_v51  ;;  %3171 = vmatpush3.bf16.msra.mxu1 %v3484_v52 }
 0xd41   : > { %3150 = vmatprep.subr.bf16.mxu0 %v3485_v53  ;;  %3172 = vmatprep.subr.bf16.mxu1 %v3486_v54 }
 0xd44   : > { %3151 = vmatpush3.bf16.msra.mxu0 %v3487_v55  ;;  %3173 = vmatpush3.bf16.msra.mxu1 %v3488_v57 }
 0xd45   : > { %3152 = vmatprep.subr.bf16.mxu0 %v3489_v59  ;;  %3174 = vmatprep.subr.bf16.mxu1 %v3490_v61 }
 0xd48   : > { %3153 = vmatpush3.bf16.msra.mxu0 %v3491_v63  ;;  %3175 = vmatpush3.bf16.msra.mxu1 %v3492_v0 }
 0xd49   : > { %3154 = vmatprep.subr.bf16.mxu0 %v3493_v1  ;;  %3176 = vmatprep.subr.bf16.mxu1 %v3494_v2 }
 0xd4c   : > { %3155 = vmatpush3.bf16.msra.mxu0 %v3495_v3  ;;  %3177 = vmatpush3.bf16.msra.mxu1 %v3496_v4 }
 0xd4d   : > { %3156 = vmatprep.subr.bf16.mxu0 %v3497_v5  ;;  %3178 = vmatprep.subr.bf16.mxu1 %v3498_v36 }
 0xd50   : > { %3157 = vmatpush3.bf16.msra.mxu0 %v3499_v9  ;;  %3179 = vmatpush3.bf16.msra.mxu1 %v3500_v11 }
 0xd51   : > { %3158 = vmatprep.subr.bf16.mxu0 %v3501_v12  ;;  %3180 = vmatprep.subr.bf16.mxu1 %v3502_v13 }
 0xd54   : > { %3159 = vmatpush3.bf16.msra.mxu0 %v3503_v14  ;;  %3181 = vmatpush3.bf16.msra.mxu1 %v3504_v15 }
 0xdf7   : > { %v2205_v56 = vpop.f32.mrf.mxu0  ;;  %v2248_v60 = vpop.f32.mrf.mxu1 }
 0xdf8   : > { %v4237_v22 = vadd.f32 %v2205_v56, %v1994_v18  ;;  %v4239_v58 = vadd.f32 %v2248_v60, %v2002_v19 }
 0xdf9   : > { %v2207_v62 = vpop.f32.mrf.mxu0  ;;  %v2250_v23 = vpop.f32.mrf.mxu1 }
 0xdfa   : > { %v2265_v24 = vmul.f32 0.044715, %v4237_v22  ;;  %v2267_v25 = vmul.f32 0.044715, %v4239_v58  ;;  %v2208_v7 = vadd.f32 %v2207_v62, %v1998_v29  ;;  %v4243_v28 = vadd.f32 %v2250_v23, %v2006_v21 }
 0xdfb   : > { %v2209_v8 = vpop.f32.mrf.mxu0  ;;  %v2252_v26 = vpop.f32.mrf.mxu1  ;;  %v2257_v62 = vmul.f32 0.5, %v4237_v22 }
 0xdfc   : > { %v2273_v6 = vmul.f32 %v2265_v24, %v4237_v22  ;;  %v2275_v10 = vmul.f32 %v2267_v25, %v4239_v58  ;;  %v2266_v27 = vmul.f32 0.044715, %v2208_v7  ;;  %v2268_v30 = vmul.f32 0.044715, %v4243_v28 }
 0xdfd   : > { %v2210_v32 = vadd.f32 %v2209_v8, %v1994_v18  ;;  %v4248_v20 = vadd.f32 %v2252_v26, %v2002_v19  ;;  %v2211_v33 = vpop.f32.mrf.mxu0  ;;  %v2254_v34 = vpop.f32.mrf.mxu1  ;;  %v2258_v56 = vmul.f32 0.5, %v2208_v7 }
 0xdfe   : > { %v2281_v35 = vmul.f32 %v2273_v6, %v4237_v22  ;;  %v2283_v37 = vmul.f32 %v2275_v10, %v4239_v58  ;;  %v2274_v38 = vmul.f32 %v2266_v27, %v2208_v7  ;;  %v2276_v43 = vmul.f32 %v2268_v30, %v4243_v28 }
 0xdff   : > { %v2269_v39 = vmul.f32 0.044715, %v2210_v32  ;;  %v2271_v41 = vmul.f32 0.044715, %v4248_v20  ;;  %v2212_v42 = vadd.f32 %v2211_v33, %v1998_v29  ;;  %v2255_v44 = vadd.f32 %v2254_v34, %v2006_v21 }
 0xe00   : > { %v2289_v45 = vadd.f32 %v2281_v35, %v4237_v22  ;;  %v2291_v46 = vadd.f32 %v2283_v37, %v4239_v58  ;;  %v2282_v47 = vmul.f32 %v2274_v38, %v2208_v7  ;;  %v2284_v48 = vmul.f32 %v2276_v43, %v4243_v28 }
 0xe01   : > { %v2277_v49 = vmul.f32 %v2269_v39, %v2210_v32  ;;  %v2279_v50 = vmul.f32 %v2271_v41, %v4248_v20  ;;  %v2270_v51 = vmul.f32 0.044715, %v2212_v42  ;;  %v2272_v52 = vmul.f32 0.044715, %v2255_v44 }
 0xe02   : > { %v2297_v53 = vmul.f32 0.7978846, %v2289_v45  ;;  %v2299_v54 = vmul.f32 0.7978846, %v2291_v46  ;;  %v2290_v55 = vadd.f32 %v2282_v47, %v2208_v7  ;;  %v2292_v1 = vadd.f32 %v2284_v48, %v4243_v28 }
 0xe03   : > { %v2285_v57 = vmul.f32 %v2277_v49, %v2210_v32  ;;  %v2287_v59 = vmul.f32 %v2279_v50, %v4248_v20  ;;  %v2278_v61 = vmul.f32 %v2270_v51, %v2212_v42  ;;  %v2280_v63 = vmul.f32 %v2272_v52, %v2255_v44 }
 0xe04   : > { %v2298_v0 = vmul.f32 0.7978846, %v2290_v55  ;;  %3545 = vtanh.f32 %v2297_v53  ;;  %v2300_v36 = vmul.f32 0.7978846, %v2292_v1  ;;  %v2261_v8 = vmul.f32 0.5, %v2210_v32 }
 0xe05   : > { %v2293_v2 = vadd.f32 %v2285_v57, %v2210_v32  ;;  %v2295_v3 = vadd.f32 %v2287_v59, %v4248_v20  ;;  %v2286_v4 = vmul.f32 %v2278_v61, %v2212_v42  ;;  %3547 = vtanh.f32 %v2299_v54  ;;  %v3089_v59 = vld [vmem:[%s756_s28] ss:$0 sm:$0xff] }
 0xe06   : > { %v2288_v5 = vmul.f32 %v2280_v63, %v2255_v44  ;;  %3549 = vtanh.f32 %v2298_v0  ;;  %v2262_v27 = vmul.f32 0.5, %v2212_v42  ;;  %v2263_v33 = vmul.f32 0.5, %v4248_v20 }
 0xe07   : > { %v2301_v9 = vmul.f32 0.7978846, %v2293_v2  ;;  %v2303_v11 = vmul.f32 0.7978846, %v2295_v3  ;;  %v2294_v12 = vadd.f32 %v2286_v4, %v2212_v42  ;;  %3551 = vtanh.f32 %v2300_v36 }
 0xe08   : > { %v2296_v13 = vadd.f32 %v2288_v5, %v2255_v44  ;;  %v2260_v35 = vmul.f32 0.5, %v4243_v28  ;;  %v2264_v37 = vmul.f32 0.5, %v2255_v44  ;;  %v2259_v22 = vmul.f32 0.5, %v4239_v58 }
 0xe09   : > { %3553 = vtanh.f32 %v2301_v9  ;;  %v2302_v14 = vmul.f32 0.7978846, %v2294_v12 }
 0xe0a   : > { %3555 = vtanh.f32 %v2303_v11  ;;  %v2304_v15 = vmul.f32 0.7978846, %v2296_v13 }
 0xe0b   : > { %3557 = vtanh.f32 %v2302_v14 }
 0xe0c   : > { %3559 = vtanh.f32 %v2304_v15 }
 0xe11   : > { %v3546_v16 = vpop.eup %3545 }
 0xe12   : > { %v3548_v17 = vpop.eup %3547  ;;  %v2313_v26 = vadd.f32 1.0, %v3546_v16 }
 0xe13   : > { %v3550_v18 = vpop.eup %3549  ;;  %v2315_v34 = vadd.f32 1.0, %v3548_v17 }
 0xe14   : > { %v3552_v19 = vpop.eup %3551  ;;  %v2314_v60 = vadd.f32 1.0, %v3550_v18  ;;  %v2321_v46 = vmul.f32 %v2313_v26, %v2257_v62 }
 0xe15   : > { %v2316_v25 = vadd.f32 1.0, %v3552_v19  ;;  %v2323_v48 = vmul.f32 %v2315_v34, %v2259_v22 }
 0xe16   : > { %v3554_v29 = vpop.eup %3553  ;;  %v2322_v43 = vmul.f32 %v2314_v60, %v2258_v56 }
 0xe17   : > { %v3556_v21 = vpop.eup %3555  ;;  %v2317_v23 = vadd.f32 1.0, %v3554_v29  ;;  %v2324_v45 = vmul.f32 %v2316_v25, %v2260_v35 }
 0xe18   : > { %v3558_v24 = vpop.eup %3557  ;;  %v2319_v6 = vadd.f32 1.0, %v3556_v21 }
 0xe19   : > { %v3560_v10 = vpop.eup %3559  ;;  %v2318_v30 = vadd.f32 1.0, %v3558_v24  ;;  %v2325_v7 = vmul.f32 %v2317_v23, %v2261_v8 }
 0xe1a   : > { %v2320_v38 = vadd.f32 1.0, %v3560_v10  ;;  %v2327_v41 = vmul.f32 %v2319_v6, %v2263_v33 }
 0xe1b   : > { %v2326_v39 = vmul.f32 %v2318_v30, %v2262_v27  ;;  %v2329_v49 = vpack.c.bf16 %v2325_v7, %v2321_v46 }
 0xe1c   : > { %v2328_v32 = vmul.f32 %v2320_v38, %v2264_v37  ;;  %v2331_v20 = vpack.c.bf16 %v2327_v41, %v2323_v48 }
 0xe1d   : > { %v2330_v47 = vpack.c.bf16 %v2326_v39, %v2322_v43 }
 0xe1e   : > { %v2332_v42 = vpack.c.bf16 %v2328_v32, %v2324_v45 }
 0xe1f   : > { %2621 = vmatprep.mubr.bf16.mxu0 %v2330_v47 }
 0xe20   : > { %2662 = vmatprep.mubr.bf16.mxu1 %v2332_v42  ;;  %2622 = vmatmul.mubr.bf16.vlgmr.msra.gmra.mxu0 %v2329_v49 }
 0xe21   : > { %2663 = vmatmul.mubr.bf16.vlgmr.msra.gmra.mxu1 %v2331_v20 }
 0xee0   : > { %v3160_v28 = vpop.f32.mrf.mxu0 }
 0xee1   : > { %v3182_v44 = vpop.f32.mrf.mxu1 }
 0xee2   : > { %v3161_v50 = vpop.f32.mrf.mxu0 }
 0xee3   : > { %v3162_v51 = vadd.f32 %v3161_v50, %v3160_v28  ;;  %v3183_v52 = vpop.f32.mrf.mxu1 }
 0xee4   : > { %v3184_v58 = vadd.f32 %v3183_v52, %v3182_v44  ;;  %v3163_v53 = vpop.f32.mrf.mxu0 }
 0xee5   : > { %v3185_v54 = vpop.f32.mrf.mxu1 }
 0xee6   : > { %v2665_v55 = vadd.f32 %v3184_v58, %v3162_v51  ;;  %v3164_v57 = vpop.f32.mrf.mxu0 }
 0xee7   : > { %v3165_v61 = vadd.f32 %v3164_v57, %v3163_v53  ;;  %v3186_v63 = vpop.f32.mrf.mxu1 }
 0xee8   : > { %v2671_v0 = vadd.f32 %v2665_v55, %v4137_v31  ;;  %v3187_v1 = vadd.f32 %v3186_v63, %v3185_v54 }
 0xeea   : > { %v2680_v2 = vadd.f32 %v3089_v59, %v2671_v0  ;;  %v2668_v3 = vadd.f32 %v3187_v1, %v3165_v61 }
 0xeec   : > { %2682 = vst [vmem:[#allocation2] sm:$0xff] %v2680_v2  ;;  %v2672_v4 = vadd.f32 %v2668_v3, %v4140_v40  ;;  %2687 = sbr.rel (%p3090_p1) target bundleno = 4138 (0x102a), region = 96 }
 0xeee   : > { %v2681_v5 = vadd.f32 %v3089_v59, %v2672_v4 }
 0xef0   : > { %2683 = vst [vmem:[#allocation2 + $0x8] sm:$0xff] %v2681_v5 }
 0xef1   : > { %2692 = vadd.xlane.f32.xlu0 %v2680_v2  ;;  %v3091_v56 = vld [vmem:[%s4405_s29] ss:$0 sm:$0xff]  ;;  %v2688_v25 = vld [vmem:[#allocation3 + $0x8] sm:$0xff]  ;;  %v2689_v27 = vld [vmem:[#allocation3] sm:$0xff] }
 0xef2   : > { %v3092_v62 = vld [vmem:[%s4406_s18] ss:$0 sm:$0xff] }
 0xef5   : > { %2694 = vadd.xlane.f32.xlu0 %v2681_v5 }
 0xf7a   : > { %v2693_v36 = vpop.xlane.xlu0 %2692 }
 0xf7b   : > { %v2696_v9 = vmul.f32 0.0078125, %v2693_v36 }
 0xf7d   : > { %v2698_v11 = vsub.f32 %v2680_v2, %v2696_v9 }
 0xf7e   : > { %v2695_v12 = vpop.xlane.xlu0 %2694 }
 0xf7f   : > { %v2697_v13 = vmul.f32 0.0078125, %v2695_v12  ;;  %v2700_v14 = vmul.f32 %v2698_v11, %v2698_v11 }
 0xf81   : > { %v2699_v31 = vsub.f32 %v2681_v5, %v2697_v13  ;;  %2702 = vadd.xlane.f32.xlu1 %v2700_v14 }
 0xf83   : > { %v2701_v15 = vmul.f32 %v2699_v31, %v2699_v31 }
 0xf85   : > { %2704 = vadd.xlane.f32.xlu1 %v2701_v15 }
0x100a   : > { %v2703_v16 = vpop.xlane.xlu1 %2702 }
0x100b   : > { %v2706_v17 = vmul.f32 0.0078125, %v2703_v16 }
0x100d   : > { %v2708_v40 = vadd.f32 1e-06, %v2706_v17 }
0x100e   : > { %v2705_v18 = vpop.xlane.xlu1 %2704 }
0x100f   : > { %3563 = vrsqrt.f32 %v2708_v40  ;;  %v2707_v19 = vmul.f32 0.0078125, %v2705_v18 }
0x1011   : > { %v2709_v29 = vadd.f32 1e-06, %v2707_v19 }
0x1013   : > { %3565 = vrsqrt.f32 %v2709_v29 }
0x101c   : > { %v3564_v21 = vpop.eup %3563 }
0x101d   : > { %v2712_v60 = vmul.f32 %v3564_v21, %v2698_v11 }
0x101f   : > { %v2720_v23 = vmul.f32 %v3091_v56, %v2712_v60 }
0x1020   : > { %v3566_v24 = vpop.eup %3565 }
0x1021   : > { %v2728_v8 = vadd.f32 %v3092_v62, %v2720_v23  ;;  %v2713_v26 = vmul.f32 %v3566_v24, %v2699_v31 }
0x1023   : > { %v2730_v6 = vadd.f32 %v2728_v8, %v2688_v25  ;;  %v2721_v10 = vmul.f32 %v3091_v56, %v2713_v26 }
0x1025   : > { %2732 = vst [vmem:[#allocation3 + $0x8] sm:$0xff] %v2730_v6  ;;  %v2729_v30 = vadd.f32 %v3092_v62, %v2721_v10 }
0x1027   : > { %v2731_v33 = vadd.f32 %v2729_v30, %v2689_v27 }
0x1029   : > { %2733 = vst [vmem:[#allocation3] sm:$0xff] %v2731_v33 }
0x102a PF: > { %s4407_s16 = sld [smem:[#allocation10_spill]] }
0x1030   : > { %p3093_p2 = scmp.ne.s32.totalorder %s4407_s16, 2 }
0x1032   : > { %2737 = sbr.rel (%p3093_p2) target bundleno = 4155 (0x103b), region = 100 }
0x1037   : > { %v2738_v34 = vld [vmem:[#allocation3 + $0x8] sm:$0xff]  ;;  %v2739_v35 = vld [vmem:[#allocation3] sm:$0xff] }
0x1038   : > { %v2740_v37 = vmul.f32 0.5, %v2738_v34  ;;  %v2741_v38 = vmul.f32 0.5, %v2739_v35 }
0x103a   : > { %2742 = vst [vmem:[%s3902_s5 - $0x1] sm:$0xfe] %v2740_v37  ;;  %2743 = vst [vmem:[%s3902_s5 + $0x7] sm:$0x1] %v2741_v38 }
0x103b PF: > { %s4408_s19 = sld [smem:[#allocation11_spill]]  ;;  %s2758_s25 = sshll.u32 %s3902_s5, 4  ;;  %s2759_s25 = int_to_ptr.vmem [resolvable:$true] %s2758_s25 }
0x103c   : > { %s4409_s21 = sld [smem:[#allocation8_spill]]  ;;  %s3567_s20 = scalar_lea.vmem %s2759_s25, 128 }
0x103d   : > { %s4411_s0 = sld [smem:[#allocation29_spill]]  ;;  %p3568_p4 = scmp.ne.s32.totalorder %s2759_s25, %s3567_s20 }
0x103e   : > { %s3669_s22 = smov [#allocation4]  }
0x103f   : > { %p3569_p5 = pnand %p3568_p4, %p3809_p3  ;;  %s3571_s28 = sshll.u32 %s3669_s22, 4  ;;  %s3572_s28 = int_to_ptr.vmem [resolvable:$false] %s3571_s28 }
0x1040   : > { %s3573_s29 = scalar_lea.vmem %s3572_s28, 256  ;;  %p3574_p7 = scmp.lt.s32.totalorder %s2759_s25, %s3572_s28 }
0x1041   : > { %s3095_s23 = sshll.u32 %s4408_s19, 7  ;;  %p3570_p6 = pneg %p3569_p5 }
0x1042   : > { %s4413_s17 = sand.u32 1, %s4409_s21   ;;  %p3575_p8 = scmp.lt.s32.totalorder %s3573_s29, %s3567_s20 }
0x1043   : > { %s4412_s1 = smov %s4411_s0  ;;  %s2756_s24 = scalar_lea.hbm %s4411_s0, %s3095_s23 }
0x1044   : > { %s2745_s4 = scalar_lea.sflag [#allocation5], %s4413_s17  ;;  %p3576_p10 = por %p3575_p8, %p3574_p7 }
0x1046   : > { %p3577_p11 = pnand %p3576_p10, %p3570_p6 }
0x1048   : > { %3580 = shalt.err (!%p3577_p11)
}
0x1049   : > { %s3581_s2 = scalar_lea.hbm %s2756_s24, 128  ;;  %s3585_s18 = scalar_lea.hbm %s4412_s1, 256 }
0x104a   : > { %p3582_p12 = scmp.ne.s32.totalorder %s2756_s24, %s3581_s2  ;;  %p3586_p1 = scmp.lt.s32.totalorder %s2756_s24, %s4412_s1 }
0x104b   : > { %p3587_p2 = scmp.lt.s32.totalorder %s3585_s18, %s3581_s2 }
0x104c   : > { %p3583_p13 = pnand %p3582_p12, %p3809_p3 }
0x104d   : > { %p3588_p4 = por %p3587_p2, %p3586_p1 }
0x104e   : > { %p3584_p0 = pneg %p3583_p13 }
0x1050   : > { %p3589_p5 = pnand %p3588_p4, %p3584_p0 }
0x1052   : > { %3592 = shalt.err (!%p3589_p5)
}
0x1053   : > { %3302 = dma.vmem_to_hbm [thread:$0]  (%p3809_p3), %s2759_s25, 128, %s2756_s24, %s2745_s4  }
0x1054 PF: > { %s4414_s21 = sld [smem:[#allocation14_spill]] }
0x1055   : > { %s4415_s23 = sld [smem:[#allocation7_spill]] }
0x105a   : > { %p3308_p6 = scmp.ge.s32.totalorder %s4414_s21, 2 }
0x105b   : > { %s2770_s27 = sand.u32 1, %s4415_s23  }
0x105c   : > { %p3305_p7 = pnand %p3308_p6, %p3819_p9  ;;  %s2771_s0 = scalar_lea.sflag [#allocation5], %s2770_s27 }
0x105e   : > { %p3306_p8 = pneg %p3305_p7 }
0x1060   : > { %3626 = dma.done.wait (%p3306_p8), %s2771_s0, 128  }
0x1061   : > { %3628 = vsyncadd (%p3306_p8), %s2771_s0, 4294967168  ;;  %s30_s30 = sadd.s32 1, %s4414_s21   ;;  %s4417_s24 = sld [smem:[#allocation8_spill]] }
0x1062   : > { %p27_p10 = scmp.ge.s32.totalorder %s30_s30, 8   ;;  %s4418_s25 = sld [smem:[#allocation9_spill]] }
0x1063   : > { %s4419_s26 = sld [smem:[#allocation19_spill]] }
0x1064   : > { %s4420_s27 = sld [smem:[#allocation12_spill]]  ;;  %29 = sbr.rel (!%p27_p10) target bundleno = 16 (0x10), region = 171 }
0x1065   : > { %s4421_s28 = sld [smem:[#allocation13_spill]] }
0x1066   : > { %s4422_s29 = sld [smem:[#allocation15_spill]] }
0x1067   : > { %s4423_s0 = sld [smem:[#allocation17_spill]] }
0x1069   :  { %2776 = vsyncpa [#allocation5], 1 }
0x106a   :  { %2778 = vsyncpa [#allocation5 + $0x1], 1 }

</bundles_post_ra>
